<compile_context>
chip_gen: v7x
topology: tpu7x:2x2x1
jax: 0.10.0
libtpu: 0.0.40
codegen_flags: <defaults>
</compile_context>

<pallas_src>
import functools

import jax
import jax.numpy as jnp
from jax import lax
from jax.experimental import pallas as pl
from jax.experimental.pallas import tpu as pltpu


# -----------------------------------------------------------------------------
# Fused kernel: conv1x1(search) + conv1x1(kernel) + depthwise xcorr + BN(train)
# grid = (Cout // CT, B); axis 0 "parallel" (independent channel tiles),
# axis 1 "arbitrary" (batch reduction for BN stats; query block stays resident).
# -----------------------------------------------------------------------------
def _fused_neck_kernel(Ws, Wk, Wo, inv_count, eps,
                       s_ref, k_ref, ws_ref, bs_ref, wk_ref, bk_ref,
                       g_ref, bt_ref, o1_ref, o2_ref, sum_ref, sq_ref):
    # s_ref : (Cin, Hs*Ws)   k_ref : (Cin, Hk*Wk)
    # ws/wk : (CT, Cin)      bs/bk/g/bt : (CT, 1)
    # o1_ref: (CT, Hs*Ws)    -- projected search, this (ct, b) tile
    # o2_ref: (B, CT, Lv)    -- flat xcorr, resident across all b for this ct
    # sum_ref/sq_ref: (CT, 1) VMEM scratch accumulators (per channel tile)
    b = pl.program_id(1)
    nb = pl.num_programs(1)

    cin = s_ref.shape[0]
    hwk = k_ref.shape[1]
    hk = hwk // Wk
    ct, lv = o2_ref.shape[1], o2_ref.shape[2]

    @pl.when(b == 0)
    def _init():
        sum_ref[...] = jnp.zeros_like(sum_ref)
        sq_ref[...] = jnp.zeros_like(sq_ref)

    # ---- 1x1 conv, search branch (lane-dense, bias folded into ci == 0) ----
    w_s = ws_ref[...]                                  # (CT, Cin), hoisted
    xs = s_ref[...]                                    # (Cin, HWs)
    sp = w_s[:, 0:1] * xs[0:1, :] + bs_ref[...]
    for ci in range(1, cin):
        sp = sp + w_s[:, ci:ci + 1] * xs[ci:ci + 1, :]
    o1_ref[...] = sp                                   # unmasked 256-lane store

    # ---- 1x1 conv, kernel branch (tiny, stays in registers) ----------------
    w_k = wk_ref[...]
    xk = k_ref[...]
    kp = w_k[:, 0:1] * xk[0:1, :] + bk_ref[...]
    for ci in range(1, cin):
        kp = kp + w_k[:, ci:ci + 1] * xk[ci:ci + 1, :]  # (CT, Hk*Wk)

    # ---- depthwise xcorr, fully unrolled over the Hk*Wk taps ----------------
    # Flat layout: out[c, i*Ws + j] = sum_{p,q} s[c, (i+p)*Ws + (j+q)] * k[c,p,q]
    # -> each tap is a lane-offset window of the VMEM-resident o1 block.
    # acc is (CT, Lv) ~ 2 vregs for CT=8: no register spills in the tap loop.
    acc = jnp.zeros((ct, lv), jnp.float32)
    for p in range(hk):
        for q in range(Wk):
            off = p * Ws + q
            win = o1_ref[:, off:off + lv]               # (CT, Lv) VMEM load
            t = p * Wk + q
            acc = acc + win * kp[:, t:t + 1]            # broadcast FMA

    o2_ref[b] = acc                                     # raw xcorr, this batch

    # ---- BN statistics (mask the j >= Wo "wrap" columns out of the stats) ---
    col = lax.broadcasted_iota(jnp.int32, (1, lv), 1) % Ws
    maskf = (col < Wo).astype(jnp.float32)              # (1, Lv)
    masked = acc * maskf
    sum_ref[...] = sum_ref[...] + jnp.sum(masked, axis=1, keepdims=True)
    sq_ref[...] = sq_ref[...] + jnp.sum(masked * acc, axis=1, keepdims=True)

    # ---- BN finalize: per-batch-slab loop, never materialize (B,CT,Lv) ------
    @pl.when(b == nb - 1)
    def _finalize():
        mean = sum_ref[...] * inv_count                 # (CT, 1)
        var = sq_ref[...] * inv_count - mean * mean     # biased (train mode)
        scale = g_ref[...] * lax.rsqrt(var + eps)
        shift = bt_ref[...] - mean * scale

        def _apply(bi, carry):
            o2_ref[bi] = o2_ref[bi] * scale + shift
            return carry

        lax.fori_loop(0, o2_ref.shape[0], _apply, 0, unroll=True)


def trans_neck_forward(search, kernel, w_s, b_s, w_k, b_k, gamma, beta,
                       *, eps=1e-5, ct=None):
    """search: (B, Cin, Hs, Ws), kernel: (B, Cin, Hk, Wk) -> (s_proj, query)."""
    B, Cin, Hs, Ws = search.shape
    Bk, Cin_k, Hk, Wk = kernel.shape
    assert Bk == B and Cin_k == Cin
    Cout = w_s.shape[0]
    Ho, Wo = Hs - Hk + 1, Ws - Wk + 1
    HWs, HWk = Hs * Ws, Hk * Wk
    Lv = (Ho - 1) * Ws + Wo                 # valid flat xcorr length

    if ct is None:
        ct = 8 if (Cout % 8 == 0 and Cout >= 8) else Cout   # review: 8-16 chunk
    nct = Cout // ct

    kern = functools.partial(_fused_neck_kernel, Ws, Wk, Wo,
                             1.0 / float(B * Ho * Wo), float(eps))

    s_flat = search.reshape(B, Cin, HWs)    # contiguous merge: free
    k_flat = kernel.reshape(B, Cin, HWk)

    s_proj_flat, q_flat = pl.pallas_call(
        kern,
        grid=(nct, B),
        in_specs=[
            pl.BlockSpec((None, Cin, HWs), lambda c, b: (b, 0, 0)),
            pl.BlockSpec((None, Cin, HWk), lambda c, b: (b, 0, 0)),
            pl.BlockSpec((ct, Cin), lambda c, b: (c, 0)),
            pl.BlockSpec((ct, 1), lambda c, b: (c, 0)),
            pl.BlockSpec((ct, Cin), lambda c, b: (c, 0)),
            pl.BlockSpec((ct, 1), lambda c, b: (c, 0)),
            pl.BlockSpec((ct, 1), lambda c, b: (c, 0)),
            pl.BlockSpec((ct, 1), lambda c, b: (c, 0)),
        ],
        out_specs=(
            # projected search: new block every step, lane-dense writeback
            pl.BlockSpec((None, ct, HWs), lambda c, b: (b, c, 0)),
            # query: resident across the batch axis (BN needs global stats)
            pl.BlockSpec((B, ct, Lv), lambda c, b: (0, c, 0)),
        ),
        out_shape=(
            jax.ShapeDtypeStruct((B, Cout, HWs), jnp.float32),
            jax.ShapeDtypeStruct((B, Cout, Lv), jnp.float32),
        ),
        scratch_shapes=[pltpu.VMEM((ct, 1), jnp.float32),
                        pltpu.VMEM((ct, 1), jnp.float32)],
        compiler_params=pltpu.CompilerParams(
            dimension_semantics=("parallel", "arbitrary")),
    )(s_flat, k_flat, w_s, b_s.reshape(Cout, 1), w_k, b_k.reshape(Cout, 1),
      gamma.reshape(Cout, 1), beta.reshape(Cout, 1))

    s_proj = s_proj_flat.reshape(B, Cout, Hs, Ws)
    # crop flat (row-stride Ws) xcorr to (Ho, Wo): pad 3 tail lanes, reshape, slice
    q_pad = jnp.pad(q_flat, ((0, 0), (0, 0), (0, Ho * Ws - Lv)))
    query_embd = q_pad.reshape(B, Cout, Ho, Ws)[:, :, :, :Wo]
    return s_proj, query_embd


class TransNeckPallas:
    """Pallas TPU port of TransNeck.forward (single fused pallas_call)."""

    def __init__(self, w_search, b_search, w_kernel, b_kernel, bn_gamma, bn_beta,
                 eps=1e-5):
        self.w_search, self.b_search = w_search, b_search
        self.w_kernel, self.b_kernel = w_kernel, b_kernel
        self.bn_gamma, self.bn_beta = bn_gamma, bn_beta
        self.eps = eps

    def __call__(self, search, kernel, box=None):
        # `box` is accepted and ignored, matching the PyTorch forward.
        return trans_neck_forward(search, kernel,
                                  self.w_search, self.b_search,
                                  self.w_kernel, self.b_kernel,
                                  self.bn_gamma, self.bn_beta, eps=self.eps)


# -----------------------------------------------------------------------------
# Pure-JAX reference (correctness check only)
# -----------------------------------------------------------------------------
def reference(neck, search, kernel):
    s = (jnp.einsum("bchw,dc->bdhw", search, neck.w_search)
         + neck.b_search[None, :, None, None])
    k = (jnp.einsum("bchw,dc->bdhw", kernel, neck.w_kernel)
         + neck.b_kernel[None, :, None, None])
    B, C, Hs, Ws = s.shape
    Hk, Wk = k.shape[2], k.shape[3]
    Ho, Wo = Hs - Hk + 1, Ws - Wk + 1
    out = jnp.zeros((B, C, Ho, Wo), jnp.float32)
    for p in range(Hk):
        for q in range(Wk):
            out = out + s[:, :, p:p + Ho, q:q + Wo] * k[:, :, p:p + 1, q:q + 1]
    mean = jnp.mean(out, axis=(0, 2, 3), keepdims=True)
    var = jnp.mean((out - mean) ** 2, axis=(0, 2, 3), keepdims=True)
    qe = ((out - mean) * lax.rsqrt(var + 1e-5)
          * neck.bn_gamma[None, :, None, None] + neck.bn_beta[None, :, None, None])
    return s, qe


if __name__ == "__main__":
    B, in_dim, hidden_dim = 2, 4, 32
    Hs = Ws = 16
    Hk = Wk = 4

    key = jax.random.PRNGKey(0)
    ks, kk, kw1, kb1, kw2, kb2, kg, kbt = jax.random.split(key, 8)
    search = jax.random.normal(ks, (B, in_dim, Hs, Ws), jnp.float32)
    kernel = jax.random.normal(kk, (B, in_dim, Hk, Wk), jnp.float32)
    box = jnp.zeros((B, 4), jnp.float32)  # unused by forward (matches PyTorch)

    scale = 1.0 / (in_dim ** 0.5)  # PyTorch Conv2d default init range
    w_s = jax.random.uniform(kw1, (hidden_dim, in_dim), jnp.float32, -scale, scale)
    b_s = jax.random.uniform(kb1, (hidden_dim,), jnp.float32, -scale, scale)
    w_k = jax.random.uniform(kw2, (hidden_dim, in_dim), jnp.float32, -scale, scale)
    b_k = jax.random.uniform(kb2, (hidden_dim,), jnp.float32, -scale, scale)
    # non-trivial BN affine params to exercise the scale/shift path
    gamma = 1.0 + 0.1 * jax.random.normal(kg, (hidden_dim,), jnp.float32)
    beta = 0.1 * jax.random.normal(kbt, (hidden_dim,), jnp.float32)

    neck = TransNeckPallas(w_s, b_s, w_k, b_k, gamma, beta)

    search_proj, query_embd = neck(search, kernel, box)
    jax.block_until_ready((search_proj, query_embd))

    ref_s, ref_q = reference(neck, search, kernel)
    assert search_proj.shape == (B, hidden_dim, Hs, Ws)
    assert query_embd.shape == (B, hidden_dim, Hs - Hk + 1, Ws - Wk + 1)
    assert jnp.allclose(search_proj, ref_s, atol=1e-4, rtol=1e-4)
    assert jnp.allclose(query_embd, ref_q, atol=1e-3, rtol=1e-3)

    print("KERNEL_OK")
</pallas_src>

<mosaic_0001>
module attributes {stable_mosaic.version = 11 : i64} {
  func.func @_fused_neck_kernel(%arg0: i32, %arg1: i32, %arg2: memref<1x4x256xf32, #tpu.memory_space<vmem>>, %arg3: memref<1x4x16xf32, #tpu.memory_space<vmem>>, %arg4: memref<8x4xf32, #tpu.memory_space<vmem>>, %arg5: memref<8x1xf32, #tpu.memory_space<vmem>>, %arg6: memref<8x4xf32, #tpu.memory_space<vmem>>, %arg7: memref<8x1xf32, #tpu.memory_space<vmem>>, %arg8: memref<8x1xf32, #tpu.memory_space<vmem>>, %arg9: memref<8x1xf32, #tpu.memory_space<vmem>>, %arg10: memref<1x8x256xf32, #tpu.memory_space<vmem>>, %arg11: memref<2x8x205xf32, #tpu.memory_space<vmem>>, %arg12: memref<8x1xf32, #tpu.memory_space<vmem>>, %arg13: memref<8x1xf32, #tpu.memory_space<vmem>>) attributes {dimension_semantics = [#tpu.dimension_semantics<parallel>, #tpu.dimension_semantics<arbitrary>], iteration_bounds = array<i64: 4, 2>, scalar_prefetch = 0 : i64, scratch_operands = 2 : i64, tpu.core_type = #tpu.core_type<tc>, window_params = [{transform_indices = @transform_0, window_bounds = array<i64: 1, 4, 256>}, {transform_indices = @transform_1, window_bounds = array<i64: 1, 4, 16>}, {transform_indices = @transform_2, window_bounds = array<i64: 8, 4>}, {transform_indices = @transform_3, window_bounds = array<i64: 8, 1>}, {transform_indices = @transform_4, window_bounds = array<i64: 8, 4>}, {transform_indices = @transform_5, window_bounds = array<i64: 8, 1>}, {transform_indices = @transform_6, window_bounds = array<i64: 8, 1>}, {transform_indices = @transform_7, window_bounds = array<i64: 8, 1>}, {transform_indices = @transform_8, window_bounds = array<i64: 1, 8, 256>}, {transform_indices = @transform_9, window_bounds = array<i64: 2, 8, 205>}]} {
    %c0_i32 = arith.constant 0 : i32
    %0 = arith.cmpi eq, %arg1, %c0_i32 : i32
    %1 = arith.extui %0 : i1 to i32
    %c0_i32_0 = arith.constant 0 : i32
    %2 = arith.cmpi ne, %1, %c0_i32_0 : i32
    scf.if %2 {
      %cst_68 = arith.constant 0.000000e+00 : f32
      %202 = vector.broadcast %cst_68 : f32 to vector<8x1xf32>
      %c0_69 = arith.constant 0 : index
      %c0_70 = arith.constant 0 : index
      %203 = vector.load %arg12[%c0_69, %c0_70] : memref<8x1xf32, #tpu.memory_space<vmem>>, vector<8x1xf32>
      tpu.vector_store %arg12[%c0_69, %c0_70], %202 {strides = array<i32>} : memref<8x1xf32, #tpu.memory_space<vmem>>, vector<8x1xf32>,
      %cst_71 = arith.constant 0.000000e+00 : f32
      %204 = vector.broadcast %cst_71 : f32 to vector<8x1xf32>
      %c0_72 = arith.constant 0 : index
      %c0_73 = arith.constant 0 : index
      %205 = vector.load %arg13[%c0_72, %c0_73] : memref<8x1xf32, #tpu.memory_space<vmem>>, vector<8x1xf32>
      tpu.vector_store %arg13[%c0_72, %c0_73], %204 {strides = array<i32>} : memref<8x1xf32, #tpu.memory_space<vmem>>, vector<8x1xf32>,
    } else {
    }
    %c0 = arith.constant 0 : index
    %c0_1 = arith.constant 0 : index
    %3 = vector.load %arg4[%c0, %c0_1] : memref<8x4xf32, #tpu.memory_space<vmem>>, vector<8x4xf32>
    %c0_2 = arith.constant 0 : index
    %c0_3 = arith.constant 0 : index
    %c0_4 = arith.constant 0 : index
    %4 = vector.load %arg2[%c0_2, %c0_3, %c0_4] : memref<1x4x256xf32, #tpu.memory_space<vmem>>, vector<1x4x256xf32>
    %5 = vector.shape_cast %4 : vector<1x4x256xf32> to vector<4x256xf32>
    %6 = vector.extract_strided_slice %3 {offsets = [0, 0], sizes = [8, 1], strides = [1, 1]} : vector<8x4xf32> to vector<8x1xf32>
    %7 = vector.extract_strided_slice %5 {offsets = [0, 0], sizes = [1, 256], strides = [1, 1]} : vector<4x256xf32> to vector<1x256xf32>
    %8 = vector.broadcast %6 : vector<8x1xf32> to vector<8x256xf32>
    %9 = vector.broadcast %7 : vector<1x256xf32> to vector<8x256xf32>
    %10 = arith.mulf %8, %9 : vector<8x256xf32>
    %c0_5 = arith.constant 0 : index
    %c0_6 = arith.constant 0 : index
    %11 = vector.load %arg5[%c0_5, %c0_6] : memref<8x1xf32, #tpu.memory_space<vmem>>, vector<8x1xf32>
    %12 = vector.broadcast %11 : vector<8x1xf32> to vector<8x256xf32>
    %13 = arith.addf %10, %12 : vector<8x256xf32>
    %14 = vector.extract_strided_slice %3 {offsets = [0, 1], sizes = [8, 1], strides = [1, 1]} : vector<8x4xf32> to vector<8x1xf32>
    %15 = vector.extract_strided_slice %5 {offsets = [1, 0], sizes = [1, 256], strides = [1, 1]} : vector<4x256xf32> to vector<1x256xf32>
    %16 = vector.broadcast %14 : vector<8x1xf32> to vector<8x256xf32>
    %17 = vector.broadcast %15 : vector<1x256xf32> to vector<8x256xf32>
    %18 = arith.mulf %16, %17 : vector<8x256xf32>
    %19 = arith.addf %13, %18 : vector<8x256xf32>
    %20 = vector.extract_strided_slice %3 {offsets = [0, 2], sizes = [8, 1], strides = [1, 1]} : vector<8x4xf32> to vector<8x1xf32>
    %21 = vector.extract_strided_slice %5 {offsets = [2, 0], sizes = [1, 256], strides = [1, 1]} : vector<4x256xf32> to vector<1x256xf32>
    %22 = vector.broadcast %20 : vector<8x1xf32> to vector<8x256xf32>
    %23 = vector.broadcast %21 : vector<1x256xf32> to vector<8x256xf32>
    %24 = arith.mulf %22, %23 : vector<8x256xf32>
    %25 = arith.addf %19, %24 : vector<8x256xf32>
    %26 = vector.extract_strided_slice %3 {offsets = [0, 3], sizes = [8, 1], strides = [1, 1]} : vector<8x4xf32> to vector<8x1xf32>
    %27 = vector.extract_strided_slice %5 {offsets = [3, 0], sizes = [1, 256], strides = [1, 1]} : vector<4x256xf32> to vector<1x256xf32>
    %28 = vector.broadcast %26 : vector<8x1xf32> to vector<8x256xf32>
    %29 = vector.broadcast %27 : vector<1x256xf32> to vector<8x256xf32>
    %30 = arith.mulf %28, %29 : vector<8x256xf32>
    %31 = arith.addf %25, %30 : vector<8x256xf32>
    %c0_7 = arith.constant 0 : index
    %c0_8 = arith.constant 0 : index
    %c0_9 = arith.constant 0 : index
    %32 = vector.load %arg10[%c0_7, %c0_8, %c0_9] : memref<1x8x256xf32, #tpu.memory_space<vmem>>, vector<1x8x256xf32>
    %33 = vector.shape_cast %32 : vector<1x8x256xf32> to vector<8x256xf32>
    %34 = vector.shape_cast %31 : vector<8x256xf32> to vector<1x8x256xf32>
    tpu.vector_store %arg10[%c0_7, %c0_8, %c0_9], %34 {strides = array<i32>} : memref<1x8x256xf32, #tpu.memory_space<vmem>>, vector<1x8x256xf32>,
    %c0_10 = arith.constant 0 : index
    %c0_11 = arith.constant 0 : index
    %35 = vector.load %arg6[%c0_10, %c0_11] : memref<8x4xf32, #tpu.memory_space<vmem>>, vector<8x4xf32>
    %c0_12 = arith.constant 0 : index
    %c0_13 = arith.constant 0 : index
    %c0_14 = arith.constant 0 : index
    %36 = vector.load %arg3[%c0_12, %c0_13, %c0_14] : memref<1x4x16xf32, #tpu.memory_space<vmem>>, vector<1x4x16xf32>
    %37 = vector.shape_cast %36 : vector<1x4x16xf32> to vector<4x16xf32>
    %38 = vector.extract_strided_slice %35 {offsets = [0, 0], sizes = [8, 1], strides = [1, 1]} : vector<8x4xf32> to vector<8x1xf32>
    %39 = vector.extract_strided_slice %37 {offsets = [0, 0], sizes = [1, 16], strides = [1, 1]} : vector<4x16xf32> to vector<1x16xf32>
    %40 = vector.broadcast %38 : vector<8x1xf32> to vector<8x16xf32>
    %41 = vector.broadcast %39 : vector<1x16xf32> to vector<8x16xf32>
    %42 = arith.mulf %40, %41 : vector<8x16xf32>
    %c0_15 = arith.constant 0 : index
    %c0_16 = arith.constant 0 : index
    %43 = vector.load %arg7[%c0_15, %c0_16] : memref<8x1xf32, #tpu.memory_space<vmem>>, vector<8x1xf32>
    %44 = vector.broadcast %43 : vector<8x1xf32> to vector<8x16xf32>
    %45 = arith.addf %42, %44 : vector<8x16xf32>
    %46 = vector.extract_strided_slice %35 {offsets = [0, 1], sizes = [8, 1], strides = [1, 1]} : vector<8x4xf32> to vector<8x1xf32>
    %47 = vector.extract_strided_slice %37 {offsets = [1, 0], sizes = [1, 16], strides = [1, 1]} : vector<4x16xf32> to vector<1x16xf32>
    %48 = vector.broadcast %46 : vector<8x1xf32> to vector<8x16xf32>
    %49 = vector.broadcast %47 : vector<1x16xf32> to vector<8x16xf32>
    %50 = arith.mulf %48, %49 : vector<8x16xf32>
    %51 = arith.addf %45, %50 : vector<8x16xf32>
    %52 = vector.extract_strided_slice %35 {offsets = [0, 2], sizes = [8, 1], strides = [1, 1]} : vector<8x4xf32> to vector<8x1xf32>
    %53 = vector.extract_strided_slice %37 {offsets = [2, 0], sizes = [1, 16], strides = [1, 1]} : vector<4x16xf32> to vector<1x16xf32>
    %54 = vector.broadcast %52 : vector<8x1xf32> to vector<8x16xf32>
    %55 = vector.broadcast %53 : vector<1x16xf32> to vector<8x16xf32>
    %56 = arith.mulf %54, %55 : vector<8x16xf32>
    %57 = arith.addf %51, %56 : vector<8x16xf32>
    %58 = vector.extract_strided_slice %35 {offsets = [0, 3], sizes = [8, 1], strides = [1, 1]} : vector<8x4xf32> to vector<8x1xf32>
    %59 = vector.extract_strided_slice %37 {offsets = [3, 0], sizes = [1, 16], strides = [1, 1]} : vector<4x16xf32> to vector<1x16xf32>
    %60 = vector.broadcast %58 : vector<8x1xf32> to vector<8x16xf32>
    %61 = vector.broadcast %59 : vector<1x16xf32> to vector<8x16xf32>
    %62 = arith.mulf %60, %61 : vector<8x16xf32>
    %63 = arith.addf %57, %62 : vector<8x16xf32>
    %cst = arith.constant 0.000000e+00 : f32
    %64 = vector.broadcast %cst : f32 to vector<8x205xf32>
    %c0_17 = arith.constant 0 : index
    %c0_18 = arith.constant 0 : index
    %c0_19 = arith.constant 0 : index
    %65 = vector.load %arg10[%c0_17, %c0_18, %c0_19] : memref<1x8x256xf32, #tpu.memory_space<vmem>>, vector<1x8x205xf32>
    %66 = vector.shape_cast %65 : vector<1x8x205xf32> to vector<8x205xf32>
    %67 = vector.extract_strided_slice %63 {offsets = [0, 0], sizes = [8, 1], strides = [1, 1]} : vector<8x16xf32> to vector<8x1xf32>
    %68 = vector.broadcast %67 : vector<8x1xf32> to vector<8x205xf32>
    %69 = arith.mulf %66, %68 : vector<8x205xf32>
    %70 = arith.addf %64, %69 : vector<8x205xf32>
    %c0_20 = arith.constant 0 : index
    %c0_21 = arith.constant 0 : index
    %c1 = arith.constant 1 : index
    %71 = vector.load %arg10[%c0_20, %c0_21, %c1] : memref<1x8x256xf32, #tpu.memory_space<vmem>>, vector<1x8x205xf32>
    %72 = vector.shape_cast %71 : vector<1x8x205xf32> to vector<8x205xf32>
    %73 = vector.extract_strided_slice %63 {offsets = [0, 1], sizes = [8, 1], strides = [1, 1]} : vector<8x16xf32> to vector<8x1xf32>
    %74 = vector.broadcast %73 : vector<8x1xf32> to vector<8x205xf32>
    %75 = arith.mulf %72, %74 : vector<8x205xf32>
    %76 = arith.addf %70, %75 : vector<8x205xf32>
    %c0_22 = arith.constant 0 : index
    %c0_23 = arith.constant 0 : index
    %c2 = arith.constant 2 : index
    %77 = vector.load %arg10[%c0_22, %c0_23, %c2] : memref<1x8x256xf32, #tpu.memory_space<vmem>>, vector<1x8x205xf32>
    %78 = vector.shape_cast %77 : vector<1x8x205xf32> to vector<8x205xf32>
    %79 = vector.extract_strided_slice %63 {offsets = [0, 2], sizes = [8, 1], strides = [1, 1]} : vector<8x16xf32> to vector<8x1xf32>
    %80 = vector.broadcast %79 : vector<8x1xf32> to vector<8x205xf32>
    %81 = arith.mulf %78, %80 : vector<8x205xf32>
    %82 = arith.addf %76, %81 : vector<8x205xf32>
    %c0_24 = arith.constant 0 : index
    %c0_25 = arith.constant 0 : index
    %c3 = arith.constant 3 : index
    %83 = vector.load %arg10[%c0_24, %c0_25, %c3] : memref<1x8x256xf32, #tpu.memory_space<vmem>>, vector<1x8x205xf32>
    %84 = vector.shape_cast %83 : vector<1x8x205xf32> to vector<8x205xf32>
    %85 = vector.extract_strided_slice %63 {offsets = [0, 3], sizes = [8, 1], strides = [1, 1]} : vector<8x16xf32> to vector<8x1xf32>
    %86 = vector.broadcast %85 : vector<8x1xf32> to vector<8x205xf32>
    %87 = arith.mulf %84, %86 : vector<8x205xf32>
    %88 = arith.addf %82, %87 : vector<8x205xf32>
    %c0_26 = arith.constant 0 : index
    %c0_27 = arith.constant 0 : index
    %c16 = arith.constant 16 : index
    %89 = vector.load %arg10[%c0_26, %c0_27, %c16] : memref<1x8x256xf32, #tpu.memory_space<vmem>>, vector<1x8x205xf32>
    %90 = vector.shape_cast %89 : vector<1x8x205xf32> to vector<8x205xf32>
    %91 = vector.extract_strided_slice %63 {offsets = [0, 4], sizes = [8, 1], strides = [1, 1]} : vector<8x16xf32> to vector<8x1xf32>
    %92 = vector.broadcast %91 : vector<8x1xf32> to vector<8x205xf32>
    %93 = arith.mulf %90, %92 : vector<8x205xf32>
    %94 = arith.addf %88, %93 : vector<8x205xf32>
    %c0_28 = arith.constant 0 : index
    %c0_29 = arith.constant 0 : index
    %c17 = arith.constant 17 : index
    %95 = vector.load %arg10[%c0_28, %c0_29, %c17] : memref<1x8x256xf32, #tpu.memory_space<vmem>>, vector<1x8x205xf32>
    %96 = vector.shape_cast %95 : vector<1x8x205xf32> to vector<8x205xf32>
    %97 = vector.extract_strided_slice %63 {offsets = [0, 5], sizes = [8, 1], strides = [1, 1]} : vector<8x16xf32> to vector<8x1xf32>
    %98 = vector.broadcast %97 : vector<8x1xf32> to vector<8x205xf32>
    %99 = arith.mulf %96, %98 : vector<8x205xf32>
    %100 = arith.addf %94, %99 : vector<8x205xf32>
    %c0_30 = arith.constant 0 : index
    %c0_31 = arith.constant 0 : index
    %c18 = arith.constant 18 : index
    %101 = vector.load %arg10[%c0_30, %c0_31, %c18] : memref<1x8x256xf32, #tpu.memory_space<vmem>>, vector<1x8x205xf32>
    %102 = vector.shape_cast %101 : vector<1x8x205xf32> to vector<8x205xf32>
    %103 = vector.extract_strided_slice %63 {offsets = [0, 6], sizes = [8, 1], strides = [1, 1]} : vector<8x16xf32> to vector<8x1xf32>
    %104 = vector.broadcast %103 : vector<8x1xf32> to vector<8x205xf32>
    %105 = arith.mulf %102, %104 : vector<8x205xf32>
    %106 = arith.addf %100, %105 : vector<8x205xf32>
    %c0_32 = arith.constant 0 : index
    %c0_33 = arith.constant 0 : index
    %c19 = arith.constant 19 : index
    %107 = vector.load %arg10[%c0_32, %c0_33, %c19] : memref<1x8x256xf32, #tpu.memory_space<vmem>>, vector<1x8x205xf32>
    %108 = vector.shape_cast %107 : vector<1x8x205xf32> to vector<8x205xf32>
    %109 = vector.extract_strided_slice %63 {offsets = [0, 7], sizes = [8, 1], strides = [1, 1]} : vector<8x16xf32> to vector<8x1xf32>
    %110 = vector.broadcast %109 : vector<8x1xf32> to vector<8x205xf32>
    %111 = arith.mulf %108, %110 : vector<8x205xf32>
    %112 = arith.addf %106, %111 : vector<8x205xf32>
    %c0_34 = arith.constant 0 : index
    %c0_35 = arith.constant 0 : index
    %c32 = arith.constant 32 : index
    %113 = vector.load %arg10[%c0_34, %c0_35, %c32] : memref<1x8x256xf32, #tpu.memory_space<vmem>>, vector<1x8x205xf32>
    %114 = vector.shape_cast %113 : vector<1x8x205xf32> to vector<8x205xf32>
    %115 = vector.extract_strided_slice %63 {offsets = [0, 8], sizes = [8, 1], strides = [1, 1]} : vector<8x16xf32> to vector<8x1xf32>
    %116 = vector.broadcast %115 : vector<8x1xf32> to vector<8x205xf32>
    %117 = arith.mulf %114, %116 : vector<8x205xf32>
    %118 = arith.addf %112, %117 : vector<8x205xf32>
    %c0_36 = arith.constant 0 : index
    %c0_37 = arith.constant 0 : index
    %c33 = arith.constant 33 : index
    %119 = vector.load %arg10[%c0_36, %c0_37, %c33] : memref<1x8x256xf32, #tpu.memory_space<vmem>>, vector<1x8x205xf32>
    %120 = vector.shape_cast %119 : vector<1x8x205xf32> to vector<8x205xf32>
    %121 = vector.extract_strided_slice %63 {offsets = [0, 9], sizes = [8, 1], strides = [1, 1]} : vector<8x16xf32> to vector<8x1xf32>
    %122 = vector.broadcast %121 : vector<8x1xf32> to vector<8x205xf32>
    %123 = arith.mulf %120, %122 : vector<8x205xf32>
    %124 = arith.addf %118, %123 : vector<8x205xf32>
    %c0_38 = arith.constant 0 : index
    %c0_39 = arith.constant 0 : index
    %c34 = arith.constant 34 : index
    %125 = vector.load %arg10[%c0_38, %c0_39, %c34] : memref<1x8x256xf32, #tpu.memory_space<vmem>>, vector<1x8x205xf32>
    %126 = vector.shape_cast %125 : vector<1x8x205xf32> to vector<8x205xf32>
    %127 = vector.extract_strided_slice %63 {offsets = [0, 10], sizes = [8, 1], strides = [1, 1]} : vector<8x16xf32> to vector<8x1xf32>
    %128 = vector.broadcast %127 : vector<8x1xf32> to vector<8x205xf32>
    %129 = arith.mulf %126, %128 : vector<8x205xf32>
    %130 = arith.addf %124, %129 : vector<8x205xf32>
    %c0_40 = arith.constant 0 : index
    %c0_41 = arith.constant 0 : index
    %c35 = arith.constant 35 : index
    %131 = vector.load %arg10[%c0_40, %c0_41, %c35] : memref<1x8x256xf32, #tpu.memory_space<vmem>>, vector<1x8x205xf32>
    %132 = vector.shape_cast %131 : vector<1x8x205xf32> to vector<8x205xf32>
    %133 = vector.extract_strided_slice %63 {offsets = [0, 11], sizes = [8, 1], strides = [1, 1]} : vector<8x16xf32> to vector<8x1xf32>
    %134 = vector.broadcast %133 : vector<8x1xf32> to vector<8x205xf32>
    %135 = arith.mulf %132, %134 : vector<8x205xf32>
    %136 = arith.addf %130, %135 : vector<8x205xf32>
    %c0_42 = arith.constant 0 : index
    %c0_43 = arith.constant 0 : index
    %c48 = arith.constant 48 : index
    %137 = vector.load %arg10[%c0_42, %c0_43, %c48] : memref<1x8x256xf32, #tpu.memory_space<vmem>>, vector<1x8x205xf32>
    %138 = vector.shape_cast %137 : vector<1x8x205xf32> to vector<8x205xf32>
    %139 = vector.extract_strided_slice %63 {offsets = [0, 12], sizes = [8, 1], strides = [1, 1]} : vector<8x16xf32> to vector<8x1xf32>
    %140 = vector.broadcast %139 : vector<8x1xf32> to vector<8x205xf32>
    %141 = arith.mulf %138, %140 : vector<8x205xf32>
    %142 = arith.addf %136, %141 : vector<8x205xf32>
    %c0_44 = arith.constant 0 : index
    %c0_45 = arith.constant 0 : index
    %c49 = arith.constant 49 : index
    %143 = vector.load %arg10[%c0_44, %c0_45, %c49] : memref<1x8x256xf32, #tpu.memory_space<vmem>>, vector<1x8x205xf32>
    %144 = vector.shape_cast %143 : vector<1x8x205xf32> to vector<8x205xf32>
    %145 = vector.extract_strided_slice %63 {offsets = [0, 13], sizes = [8, 1], strides = [1, 1]} : vector<8x16xf32> to vector<8x1xf32>
    %146 = vector.broadcast %145 : vector<8x1xf32> to vector<8x205xf32>
    %147 = arith.mulf %144, %146 : vector<8x205xf32>
    %148 = arith.addf %142, %147 : vector<8x205xf32>
    %c0_46 = arith.constant 0 : index
    %c0_47 = arith.constant 0 : index
    %c50 = arith.constant 50 : index
    %149 = vector.load %arg10[%c0_46, %c0_47, %c50] : memref<1x8x256xf32, #tpu.memory_space<vmem>>, vector<1x8x205xf32>
    %150 = vector.shape_cast %149 : vector<1x8x205xf32> to vector<8x205xf32>
    %151 = vector.extract_strided_slice %63 {offsets = [0, 14], sizes = [8, 1], strides = [1, 1]} : vector<8x16xf32> to vector<8x1xf32>
    %152 = vector.broadcast %151 : vector<8x1xf32> to vector<8x205xf32>
    %153 = arith.mulf %150, %152 : vector<8x205xf32>
    %154 = arith.addf %148, %153 : vector<8x205xf32>
    %c0_48 = arith.constant 0 : index
    %c0_49 = arith.constant 0 : index
    %c51 = arith.constant 51 : index
    %155 = vector.load %arg10[%c0_48, %c0_49, %c51] : memref<1x8x256xf32, #tpu.memory_space<vmem>>, vector<1x8x205xf32>
    %156 = vector.shape_cast %155 : vector<1x8x205xf32> to vector<8x205xf32>
    %157 = vector.extract_strided_slice %63 {offsets = [0, 15], sizes = [8, 1], strides = [1, 1]} : vector<8x16xf32> to vector<8x1xf32>
    %158 = vector.broadcast %157 : vector<8x1xf32> to vector<8x205xf32>
    %159 = arith.mulf %156, %158 : vector<8x205xf32>
    %160 = arith.addf %154, %159 : vector<8x205xf32>
    %161 = arith.index_cast %arg1 : i32 to index
    %c0_50 = arith.constant 0 : index
    %c0_51 = arith.constant 0 : index
    %162 = vector.load %arg11[%161, %c0_50, %c0_51] : memref<2x8x205xf32, #tpu.memory_space<vmem>>, vector<1x8x205xf32>
    %163 = vector.shape_cast %162 : vector<1x8x205xf32> to vector<8x205xf32>
    %164 = vector.shape_cast %160 : vector<8x205xf32> to vector<1x8x205xf32>
    tpu.vector_store %arg11[%161, %c0_50, %c0_51], %164 {strides = array<i32>} : memref<2x8x205xf32, #tpu.memory_space<vmem>>, vector<1x8x205xf32>,
    %165 = tpu.iota {dimensions = array<i32: 1>} : vector<1x205xi32>
    %c16_i32 = arith.constant 16 : i32
    %c0_i32_52 = arith.constant 0 : i32
    %166 = arith.cmpi eq, %c16_i32, %c0_i32_52 : i32
    %c1_i32 = arith.constant 1 : i32
    %167 = arith.select %166, %c1_i32, %c16_i32 : i32
    %168 = vector.broadcast %167 : i32 to vector<1x205xi32>
    %169 = arith.remsi %165, %168 : vector<1x205xi32>
    %c0_i32_53 = arith.constant 0 : i32
    %170 = vector.broadcast %c0_i32_53 : i32 to vector<1x205xi32>
    %171 = arith.cmpi ne, %169, %170 : vector<1x205xi32>
    %c0_i32_54 = arith.constant 0 : i32
    %172 = vector.broadcast %c0_i32_54 : i32 to vector<1x205xi32>
    %173 = arith.cmpi slt, %169, %172 : vector<1x205xi32>
    %c0_i32_55 = arith.constant 0 : i32
    %174 = arith.cmpi slt, %167, %c0_i32_55 : i32
    %175 = vector.broadcast %174 : i1 to vector<1x205xi1>
    %176 = vector.broadcast %175 : vector<1x205xi1> to vector<1x205xi1>
    %177 = arith.xori %173, %176 : vector<1x205xi1>
    %178 = arith.andi %177, %171 : vector<1x205xi1>
    %179 = vector.broadcast %167 : i32 to vector<1x205xi32>
    %180 = arith.addi %169, %179 : vector<1x205xi32>
    %181 = arith.select %178, %180, %169 : vector<1x205xi1>, vector<1x205xi32>
    %c13_i32 = arith.constant 13 : i32
    %182 = vector.broadcast %c13_i32 : i32 to vector<1x205xi32>
    %183 = arith.cmpi slt, %181, %182 : vector<1x205xi32>
    %184 = arith.extui %183 : vector<1x205xi1> to vector<1x205xi32>
    %185 = arith.sitofp %184 : vector<1x205xi32> to vector<1x205xf32>
    %186 = vector.broadcast %185 : vector<1x205xf32> to vector<8x205xf32>
    %187 = arith.mulf %160, %186 : vector<8x205xf32>
    %c0_56 = arith.constant 0 : index
    %c0_57 = arith.constant 0 : index
    %188 = vector.load %arg12[%c0_56, %c0_57] : memref<8x1xf32, #tpu.memory_space<vmem>>, vector<8x1xf32>
    %cst_58 = arith.constant dense<0.000000e+00> : vector<8xf32>
    %189 = vector.multi_reduction <add>, %187, %cst_58 [1] : vector<8x205xf32> to vector<8xf32>
    %190 = vector.shape_cast %189 : vector<8xf32> to vector<8x1xf32>
    %191 = arith.addf %188, %190 : vector<8x1xf32>
    %c0_59 = arith.constant 0 : index
    %c0_60 = arith.constant 0 : index
    %192 = vector.load %arg12[%c0_59, %c0_60] : memref<8x1xf32, #tpu.memory_space<vmem>>, vector<8x1xf32>
    tpu.vector_store %arg12[%c0_59, %c0_60], %191 {strides = array<i32>} : memref<8x1xf32, #tpu.memory_space<vmem>>, vector<8x1xf32>,
    %c0_61 = arith.constant 0 : index
    %c0_62 = arith.constant 0 : index
    %193 = vector.load %arg13[%c0_61, %c0_62] : memref<8x1xf32, #tpu.memory_space<vmem>>, vector<8x1xf32>
    %194 = arith.mulf %187, %160 : vector<8x205xf32>
    %cst_63 = arith.constant dense<0.000000e+00> : vector<8xf32>
    %195 = vector.multi_reduction <add>, %194, %cst_63 [1] : vector<8x205xf32> to vector<8xf32>
    %196 = vector.shape_cast %195 : vector<8xf32> to vector<8x1xf32>
    %197 = arith.addf %193, %196 : vector<8x1xf32>
    %c0_64 = arith.constant 0 : index
    %c0_65 = arith.constant 0 : index
    %198 = vector.load %arg13[%c0_64, %c0_65] : memref<8x1xf32, #tpu.memory_space<vmem>>, vector<8x1xf32>
    tpu.vector_store %arg13[%c0_64, %c0_65], %197 {strides = array<i32>} : memref<8x1xf32, #tpu.memory_space<vmem>>, vector<8x1xf32>,
    %c1_i32_66 = arith.constant 1 : i32
    %199 = arith.cmpi eq, %arg1, %c1_i32_66 : i32
    %200 = arith.extui %199 : i1 to i32
    %c0_i32_67 = arith.constant 0 : i32
    %201 = arith.cmpi ne, %200, %c0_i32_67 : i32
    scf.if %201 {
      %c0_68 = arith.constant 0 : index
      %c0_69 = arith.constant 0 : index
      %202 = vector.load %arg12[%c0_68, %c0_69] : memref<8x1xf32, #tpu.memory_space<vmem>>, vector<8x1xf32>
      %cst_70 = arith.constant 2.958580e-03 : f32
      %203 = vector.broadcast %cst_70 : f32 to vector<8x1xf32>
      %204 = arith.mulf %202, %203 : vector<8x1xf32>
      %c0_71 = arith.constant 0 : index
      %c0_72 = arith.constant 0 : index
      %205 = vector.load %arg13[%c0_71, %c0_72] : memref<8x1xf32, #tpu.memory_space<vmem>>, vector<8x1xf32>
      %cst_73 = arith.constant 2.958580e-03 : f32
      %206 = vector.broadcast %cst_73 : f32 to vector<8x1xf32>
      %207 = arith.mulf %205, %206 : vector<8x1xf32>
      %208 = arith.mulf %204, %204 : vector<8x1xf32>
      %209 = arith.subf %207, %208 : vector<8x1xf32>
      %c0_74 = arith.constant 0 : index
      %c0_75 = arith.constant 0 : index
      %210 = vector.load %arg8[%c0_74, %c0_75] : memref<8x1xf32, #tpu.memory_space<vmem>>, vector<8x1xf32>
      %cst_76 = arith.constant 9.99999974E-6 : f32
      %211 = vector.broadcast %cst_76 : f32 to vector<8x1xf32>
      %212 = arith.addf %209, %211 : vector<8x1xf32>
      %213 = math.rsqrt %212 : vector<8x1xf32>
      %214 = arith.mulf %210, %213 : vector<8x1xf32>
      %c0_77 = arith.constant 0 : index
      %c0_78 = arith.constant 0 : index
      %215 = vector.load %arg9[%c0_77, %c0_78] : memref<8x1xf32, #tpu.memory_space<vmem>>, vector<8x1xf32>
      %216 = arith.mulf %204, %214 : vector<8x1xf32>
      %217 = arith.subf %215, %216 : vector<8x1xf32>
      %c0_i32_79 = arith.constant 0 : i32
      %218 = arith.index_cast %c0_i32_79 : i32 to index
      %c0_80 = arith.constant 0 : index
      %c0_81 = arith.constant 0 : index
      %219 = vector.load %arg11[%218, %c0_80, %c0_81] : memref<2x8x205xf32, #tpu.memory_space<vmem>>, vector<1x8x205xf32>
      %220 = vector.shape_cast %219 : vector<1x8x205xf32> to vector<8x205xf32>
      %221 = vector.broadcast %214 : vector<8x1xf32> to vector<8x205xf32>
      %222 = arith.mulf %220, %221 : vector<8x205xf32>
      %223 = vector.broadcast %217 : vector<8x1xf32> to vector<8x205xf32>
      %224 = arith.addf %222, %223 : vector<8x205xf32>
      %225 = arith.index_cast %c0_i32_79 : i32 to index
      %c0_82 = arith.constant 0 : index
      %c0_83 = arith.constant 0 : index
      %226 = vector.load %arg11[%225, %c0_82, %c0_83] : memref<2x8x205xf32, #tpu.memory_space<vmem>>, vector<1x8x205xf32>
      %227 = vector.shape_cast %226 : vector<1x8x205xf32> to vector<8x205xf32>
      %228 = vector.shape_cast %224 : vector<8x205xf32> to vector<1x8x205xf32>
      tpu.vector_store %arg11[%225, %c0_82, %c0_83], %228 {strides = array<i32>} : memref<2x8x205xf32, #tpu.memory_space<vmem>>, vector<1x8x205xf32>,
      %c1_i32_84 = arith.constant 1 : i32
      %229 = arith.index_cast %c1_i32_84 : i32 to index
      %c0_85 = arith.constant 0 : index
      %c0_86 = arith.constant 0 : index
      %230 = vector.load %arg11[%229, %c0_85, %c0_86] : memref<2x8x205xf32, #tpu.memory_space<vmem>>, vector<1x8x205xf32>
      %231 = vector.shape_cast %230 : vector<1x8x205xf32> to vector<8x205xf32>
      %232 = vector.broadcast %214 : vector<8x1xf32> to vector<8x205xf32>
      %233 = arith.mulf %231, %232 : vector<8x205xf32>
      %234 = vector.broadcast %217 : vector<8x1xf32> to vector<8x205xf32>
      %235 = arith.addf %233, %234 : vector<8x205xf32>
      %236 = arith.index_cast %c1_i32_84 : i32 to index
      %c0_87 = arith.constant 0 : index
      %c0_88 = arith.constant 0 : index
      %237 = vector.load %arg11[%236, %c0_87, %c0_88] : memref<2x8x205xf32, #tpu.memory_space<vmem>>, vector<1x8x205xf32>
      %238 = vector.shape_cast %237 : vector<1x8x205xf32> to vector<8x205xf32>
      %239 = vector.shape_cast %235 : vector<8x205xf32> to vector<1x8x205xf32>
      tpu.vector_store %arg11[%236, %c0_87, %c0_88], %239 {strides = array<i32>} : memref<2x8x205xf32, #tpu.memory_space<vmem>>, vector<1x8x205xf32>,
      %c2_i32 = arith.constant 2 : i32
    } else {
    }
    return
  }
  func.func @transform_0(%arg0: i32, %arg1: i32) -> (i32, i32, i32) {
    %c0_i32 = arith.constant 0 : i32
    %c0_i32_0 = arith.constant 0 : i32
    %c0_i32_1 = arith.constant 0 : i32
    return %arg1, %c0_i32, %c0_i32_0 : i32, i32, i32
  }
  func.func @transform_1(%arg0: i32, %arg1: i32) -> (i32, i32, i32) {
    %c0_i32 = arith.constant 0 : i32
    %c0_i32_0 = arith.constant 0 : i32
    %c0_i32_1 = arith.constant 0 : i32
    return %arg1, %c0_i32, %c0_i32_0 : i32, i32, i32
  }
  func.func @transform_2(%arg0: i32, %arg1: i32) -> (i32, i32) {
    %c0_i32 = arith.constant 0 : i32
    %c0_i32_0 = arith.constant 0 : i32
    return %arg0, %c0_i32 : i32, i32
  }
  func.func @transform_3(%arg0: i32, %arg1: i32) -> (i32, i32) {
    %c0_i32 = arith.constant 0 : i32
    %c0_i32_0 = arith.constant 0 : i32
    return %arg0, %c0_i32 : i32, i32
  }
  func.func @transform_4(%arg0: i32, %arg1: i32) -> (i32, i32) {
    %c0_i32 = arith.constant 0 : i32
    %c0_i32_0 = arith.constant 0 : i32
    return %arg0, %c0_i32 : i32, i32
  }
  func.func @transform_5(%arg0: i32, %arg1: i32) -> (i32, i32) {
    %c0_i32 = arith.constant 0 : i32
    %c0_i32_0 = arith.constant 0 : i32
    return %arg0, %c0_i32 : i32, i32
  }
  func.func @transform_6(%arg0: i32, %arg1: i32) -> (i32, i32) {
    %c0_i32 = arith.constant 0 : i32
    %c0_i32_0 = arith.constant 0 : i32
    return %arg0, %c0_i32 : i32, i32
  }
  func.func @transform_7(%arg0: i32, %arg1: i32) -> (i32, i32) {
    %c0_i32 = arith.constant 0 : i32
    %c0_i32_0 = arith.constant 0 : i32
    return %arg0, %c0_i32 : i32, i32
  }
  func.func @transform_8(%arg0: i32, %arg1: i32) -> (i32, i32, i32) {
    %c0_i32 = arith.constant 0 : i32
    %c0_i32_0 = arith.constant 0 : i32
    return %arg1, %arg0, %c0_i32 : i32, i32, i32
  }
  func.func @transform_9(%arg0: i32, %arg1: i32) -> (i32, i32, i32) {
    %c0_i32 = arith.constant 0 : i32
    %c0_i32_0 = arith.constant 0 : i32
    %c0_i32_1 = arith.constant 0 : i32
    return %c0_i32, %arg0, %c0_i32_0 : i32, i32, i32
  }
}

</mosaic_0001>

<bundles_post_ra>
// kernel: tpu_custom_call.1
= control target key start
LH: loop header
LB: loop body
LE: loop exit
PB: predicated region body
PF: predicated region fallthrough
CT: control target
= control target key end

     0   :  { %s2085_s0 = inlined_call_operand.vmem [shape: f32[2,4,256], index: 0, kind: input, shape index: {}]   ;;  %s2086_s1 = inlined_call_operand.vmem [shape: f32[2,4,16], index: 1, kind: input, shape index: {}]   ;;  %s2087_s2 = inlined_call_operand.vmem [shape: f32[32,4], index: 2, kind: input, shape index: {}]   ;;  %s2088_s3 = inlined_call_operand.vmem [shape: f32[32,1], index: 3, kind: input, shape index: {}]   ;;  %s2089_s4 = inlined_call_operand.vmem [shape: f32[32,4], index: 4, kind: input, shape index: {}]   ;;  %s2090_s5 = inlined_call_operand.vmem [shape: f32[32,1], index: 5, kind: input, shape index: {}]   ;;  %s2091_s6 = inlined_call_operand.vmem [shape: f32[32,1], index: 6, kind: input, shape index: {}]   ;;  %s2092_s7 = inlined_call_operand.vmem [shape: f32[32,1], index: 7, kind: input, shape index: {}]   ;;  %s2093_s8 = inlined_call_operand.hbm [shape: f32[2,32,256], index: 8, kind: output, shape index: {0}]   ;;  %s2094_s9 = inlined_call_operand.hbm [shape: f32[2,32,205], index: 9, kind: output, shape index: {1}]  }
   0x1   :  { %2114 = sst [smem:[#allocation25_spill]] %s2085_s0 }
   0x2   :  { %2115 = sst [smem:[#allocation26_spill]] %s2086_s1 }
   0x3   :  { %2116 = sst [smem:[#allocation27_spill]] %s2087_s2 }
   0x4   :  { %2117 = sst [smem:[#allocation28_spill]] %s2093_s8 }
   0x5   :  { %2118 = sst [smem:[#allocation29_spill]] %s2094_s9 }
   0x6   :  { %15 = vsyncpa [#allocation5], 0 }
   0x7   :  { %17 = vsyncpa [#allocation5 + $0x1], 0 }
   0x8   :  { %18 = vsyncpa [#allocation7], 0 }
   0x9   :  { %20 = vsyncpa [#allocation7 + $0x1], 0  ;;  %s1700_s30 = smov 0   ;;  %s1702_s10 = smov 0  }
   0xa   :  { %s1704_s11 = smov 0   ;;  %s1706_s12 = smov 0  }
   0xb   :  { %s1708_s13 = smov 0   ;;  %s1710_s14 = smov 0  }
   0xc   :  { %s1712_s15 = smov 0   ;;  %s1714_s16 = smov 0  }
   0xd   :  { %s1716_s17 = smov 0   ;;  %s1718_s18 = smov 0  }
   0xe   :  { %s1720_s19 = smov 0  }
   0xf LB: > { %2119 = sst [smem:[#allocation10_spill]] %s1569_s30  ;;  %s1258_s20 = sadd.s32 4294967295, %s1609_s19   ;;  %s1609_s19 = sphi %s1720_s19, %s26_s19   ;;  %s1605_s18 = sphi %s1718_s18, %s2163_s18   ;;  %s1601_s17 = sphi %s1716_s17, %s2162_s17   ;;  %s1597_s16 = sphi %s1714_s16, %s2161_s16   ;;  %s1593_s15 = sphi %s1712_s15, %s2160_s15   ;;  %s1589_s14 = sphi %s1710_s14, %s2159_s14   ;;  %s1585_s13 = sphi %s1708_s13, %s2165_s13   ;;  %s1581_s12 = sphi %s1706_s12, %s2164_s12   ;;  %s1577_s11 = sphi %s1704_s11, %s2157_s11   ;;  %s1573_s10 = sphi %s1702_s10, %s2156_s10   ;;  %s1569_s30 = sphi %s1700_s30, %s2155_s30  }
  0x10   : > { %2120 = sst [smem:[#allocation11_spill]] %s1573_s10  ;;  %s1259_s21 = sadd.s32 4294967294, %s1609_s19  }
  0x11   : > { %2121 = sst [smem:[#allocation12_spill]] %s1577_s11  ;;  %s35_s22 = sadd.s32 1, %s1601_s17 }
  0x12   : > { %2122 = sst [smem:[#allocation13_spill]] %s1581_s12  ;;  %s38_s23 = sadd.s32 1, %s1605_s18 }
  0x13   : > { %2123 = sst [smem:[#allocation14_spill]] %s1589_s14  ;;  %p36_p0 = scmp.ge.s32.totalorder %s35_s22, 2 }
  0x14   : > { %2124 = sst [smem:[#allocation15_spill]] %s1601_s17  ;;  %s255_s24 = sadd.s32 1, %s1589_s14 }
  0x15   : > { %2125 = sst [smem:[#allocation16_spill]] %s1605_s18  ;;  %p265_p1 = scmp.ne.s32.totalorder %s1589_s14, %s1585_s13 }
  0x16   : > { %2126 = sst [smem:[#allocation17_spill]] %s1609_s19  ;;  %p1762_p2 = scmp.eq.s32.totalorder %s1258_s20, 7 }
  0x17   : > { %s2167_s22 = smov (%p36_p0, %s35_s22), 0  ;;  %s2169_s23 = smov (!%p36_p0, %s38_s23), %s1605_s18 }
  0x18   : > { %2128 = sst [smem:[#allocation18_spill]] %s2167_s22  ;;  %s250_s26 = ssub.s32 %s1601_s17, %s2167_s22 }
  0x19   : > { %p1773_p3 = por %p1762_p2, %p265_p1  ;;  %p40_p4 = scmp.ge.s32.totalorder %s2169_s23, 4 }
  0x1a   : > { %p271_p5 = scmp.ne.s32.totalorder %s1585_s13, %s1581_s12  ;;  %p1779_p6 = scmp.eq.s32.totalorder %s1259_s21, 7 }
  0x1b   : > { %s281_s29 = sadd.s32 1, %s1577_s11  ;;  %s2171_s23 = smov (%p40_p4, %s2169_s23), 0 }
  0x1c   : > { %2131 = sst [smem:[#allocation19_spill]] %s2171_s23  ;;  %p1788_p7 = por %p1779_p6, %p271_p5 }
  0x1d   : > { %p291_p8 = scmp.ne.s32.totalorder %s1577_s11, %s1573_s10  ;;  %s251_s22 = ssub.s32 %s1605_s18, %s2171_s23 }
  0x1e   : > { %s2132_s20 = scalar_select %p1788_p7, 1, 0 }
  0x1f   : > { %p297_p9 = scmp.ne.s32.totalorder %s1573_s10, %s1569_s30  ;;  %s252_s17 = sor.u32 %s251_s22, %s250_s26 }
  0x20   : > { %2133 = sst [smem:[#allocation20_spill]] %s2132_s20  ;;  %p279_p10 = scmp.eq.s32.totalorder %s251_s22, 0 }
  0x21   : > { %p253_p11 = scmp.eq.s32.totalorder %s252_s17, 0  ;;  %p1800_p12 = por %p291_p8, %p1762_p2 }
  0x22   : > { %s1805_s12 = scalar_select %p279_p10, %s1577_s11, %s281_s29  }
  0x23   : > { %s2134_s21 = scalar_select %p1800_p12, 1, 0 }
  0x24   : > { %2136 = sst [smem:[#allocation22_spill]] %s1805_s12  ;;  %p1812_p13 = por %p297_p9, %p1779_p6 }
  0x25   : > { %2135 = sst [smem:[#allocation21_spill]] %s2134_s21  ;;  %p1262_p0 = scmp.ge.s32.totalorder %s1609_s19, 1 }
  0x26   : > { %s1808_s9 = scalar_select %p253_p11, %s1589_s14, %s255_s24  }
  0x27   : > { %s2138_s8 = scalar_select %p1812_p13, 1, 0 }
  0x28   : > { %2137 = sst [smem:[#allocation23_spill]] %s1808_s9  ;;  %p373_p1 = scmp.lt.s32.totalorder %s1609_s19, 9 }
  0x29   : > { %2139 = sst [smem:[#allocation24_spill]] %s2138_s8 }
  0x2a   : > { %p374_p4 = pnand %p1262_p0, %p373_p1 }
  0x2b   : > { %s2107_s17 = sand.u32 (!%p374_p4), 1, %s1585_s13   ;;  %s2106_s22 = sand.u32 (!%p374_p4), 1, %s1573_s10  }
  0x2c   : > { %377 = sbr.rel (%p374_p4) target bundleno = 878 (0x36e), region = 52  ;;  %s1263_s24 = sshll.u32 (!%p374_p4), %s2107_s17, 4 }
  0x2d   : > { %s1264_s25 = sshll.u32 (!%p374_p4), %s2106_s22, 5  ;;  %p442_p2 = scmp.lt.s32.totalorder (!%p374_p4), %s1593_s15, 1 }
  0x2e   : > { %p451_p5 = scmp.lt.s32.totalorder (!%p374_p4), %s1597_s16, 3  ;;  %s2140_s0 = sld [smem:[#allocation25_spill]] (!%p374_p4) }
  0x2f   : > { %s2141_s1 = sld [smem:[#allocation26_spill]] (!%p374_p4)  ;;  %s2142_s2 = sld [smem:[#allocation27_spill]] (!%p374_p4) }
  0x30   : > { %s1864_s10 = scalar_lea.vmem (!%p374_p4), [#allocation4], %s1263_s24  ;;  %s1866_s9 = scalar_lea.vmem (!%p374_p4), [#allocation6], %s1264_s25 }
  0x31   : > { %p1274_p6 = scmp.ne.s32.totalorder (!%p374_p4), %s1593_s15, 0 }
  0x33   : > { %s443_s26 = scalar_select %p442_p2, %s1593_s15, 1 }
  0x34   : > { %s452_s28 = scalar_select %p451_p5, %s1597_s16, 3 }
  0x35   : > { %s1293_s29 = sshll.u32 %s443_s26, 3  ;;  %s1267_s23 = sshll.u32 %s443_s26, 2  ;;  %vm479_vm0 = vcmask (!%p1274_p6), 7168   ;;  %v1611_v0 = vmov (!%p1274_p6), 0.0  }
  0x36   : > { %s1831_s14 = scalar_lea.vmem %s2140_s0, %s1293_s29  ;;  %s1836_s8 = scalar_lea.vmem %s2141_s1, %s1267_s23  ;;  %480 = vst.msk [vmem:[#allocation2] sm:$0xff] (!%p1274_p6), %vm479_vm0, %v1611_v0  ;;  %481 = vst.msk [vmem:[#allocation3] sm:$0xff] (!%p1274_p6), %vm479_vm0, %v1611_v0 }
  0x37   : > { %s1838_s30 = sshll.u32 %s452_s28, 3  ;;  %478 = sbr.rel (%p1274_p6) target bundleno = 62 (0x3e), region = 56 }
  0x38   : > { %s454_s26 = scalar_lea.vmem %s2142_s2, %s1838_s30  ;;  %s458_s29 = scalar_lea.vmem %s2088_s3, %s1838_s30 }
  0x39   : > { %s462_s12 = scalar_lea.vmem %s2089_s4, %s1838_s30  ;;  %s466_s1 = scalar_lea.vmem %s2090_s5, %s1838_s30 }
  0x3a   : > { %s470_s22 = scalar_lea.vmem %s2091_s6, %s1838_s30  ;;  %s474_s2 = scalar_lea.vmem %s2092_s7, %s1838_s30 }
  0x3e PF: > { %v598_v1 = vld [vmem:[%s462_s12] sm:$0xff]  ;;  %v1612_v2 = vmov 0   ;;  %v1613_v3 = vmov 1   ;;  %v1614_v5 = vmov 2   ;;  %v1615_v7 = vmov 3   ;;  %s1631_s20 = smov 112  }
  0x3f   : > { %1433 = vset.pattern.permute.xlu0 %v1612_v2  ;;  %1434 = vset.pattern.permute.xlu1 %v1613_v3  ;;  %v610_v4 = vld [vmem:[%s466_s1] sm:$0xff]  ;;  %v490_v9 = vlaneseq  ;;  %v1616_v61 = vmov 4   ;;  %s1628_s1 = smov 127   ;;  %s1632_s21 = smov 111   ;;  %vm670_vm1 = vcmask 1039360   ;;  %vm688_vm2 = vcmask 1031168  }
  0x40   : > { %602 = vperm.xlu0 %1433, %v598_v1   ;;  %618 = vperm.xlu1 %1434, %v598_v1   ;;  %v482_v6 = vld [vmem:[%s454_s26] sm:$0xff]  ;;  %s1633_s24 = smov 110   ;;  %s1634_s25 = smov 109   ;;  %vm706_vm3 = vcmask 1022976   ;;  %vm724_vm4 = vcmask 916480   ;;  %vm742_vm5 = vcmask 908288  }
  0x41   : > { %v510_v8 = vld [vmem:[%s458_s29] sm:$0xff]  ;;  %v491_v10 = vshrl.u32 %v490_v9, 7  ;;  %s1635_s26 = smov 96   ;;  %s1636_s18 = smov 95   ;;  %vm760_vm6 = vcmask 900096   ;;  %vm778_vm7 = vcmask 891904  }
  0x42   : > { %v599_v12 = vld [vmem:[%s1836_s8] sm:$0xf]  ;;  %s1629_s8 = smov 126   ;;  %s1637_s29 = smov 94   ;;  %vm796_vm8 = vcmask 785408   ;;  %vm814_vm9 = vcmask 777216  }
  0x43   : > { %v492_v11 = vsub.s32 0, %v491_v10  ;;  %v524_v13 = vsub.s32 1, %v491_v10  ;;  %v550_v14 = vsub.s32 2, %v491_v10  ;;  %v496_v16 = vsub.s32 4, %v491_v10  ;;  %v483_v19 = vld [vmem:[%s1831_s14] sm:$0xff]  ;;  %s1630_s14 = smov 125  }
  0x44   : > { %613 = vperm.xlu0 %1433, %v610_v4   ;;  %1435 = vset.pattern.permute.xlu1 %v1614_v5  ;;  %v1881_v22 = vsub.s32 3, %v491_v10  ;;  %v528_v26 = vsub.s32 5, %v491_v10  ;;  %v554_v38 = vsub.s32 6, %v491_v10  ;;  %v580_v50 = vsub.s32 7, %v491_v10  ;;  %s1638_s11 = smov 93   ;;  %s1639_s12 = smov 80  }
  0x45   : > { %628 = vperm.xlu1 %1435, %v598_v1   ;;  %v608_v15 = vrot.slane %v599_v12, %v492_v11  ;;  %v624_v20 = vrot.slane %v599_v12, %v524_v13  ;;  %v634_v21 = vrot.slane %v599_v12, %v550_v14  ;;  %v493_v24 = vrot.slane %v483_v19, %v492_v11  ;;  %s1640_s23 = smov 79   ;;  %s1641_s28 = smov 78  }
  0x46   : > { %v497_v25 = vrot.slane %v483_v19, %v496_v16  ;;  %v644_v32 = vrot.slane %v599_v12, %v1881_v22  ;;  %v525_v33 = vrot.slane %v483_v19, %v524_v13  ;;  %v529_v37 = vrot.slane %v483_v19, %v528_v26  ;;  %s1642_s17 = smov 77   ;;  %s1294_s0 = sshll.u32 %s1593_s15, 4 }
  0x47   : > { %v503_v35 = vrot.slane %v493_v24, %v492_v11  ;;  %v551_v48 = vrot.slane %v483_v19, %v550_v14  ;;  %v555_v49 = vrot.slane %v483_v19, %v554_v38  ;;  %v577_v59 = vrot.slane %v483_v19, %v1881_v22  ;;  %s930_s19 = scalar_lea.vmem %s1866_s9, %s1294_s0 [#allocation6]  ;;  %p1279_p8 = scmp.ne.s32.totalorder %s1593_s15, 1 }
  0x48   : > { %1436 = vset.pattern.permute.xlu0 %v1615_v7  ;;  %v507_v36 = vrot.slane %v497_v25, %v492_v11  ;;  %v535_v45 = vrot.slane %v525_v33, %v524_v13  ;;  %v539_v46 = vrot.slane %v529_v37, %v524_v13  ;;  %v581_v60 = vrot.slane %v483_v19, %v580_v50 }
  0x49   : > { %638 = vperm.xlu0 %1436, %v598_v1   ;;  %1437 = vset.pattern.permute.xlu1 %v1612_v2  ;;  %v561_v57 = vrot.slane %v551_v48, %v550_v14  ;;  %v565_v58 = vrot.slane %v555_v49, %v550_v14  ;;  %v587_v4 = vrot.slane %v577_v59, %v1881_v22  ;;  %v1619_v16 = vmov 9  }
  0x4a   : > { %486 = vperm.xlu1 %1437, %v482_v6   ;;  %v1622_v19 = vmov 8   ;;  %v1627_v24 = vmov 14   ;;  %vm832_vm10 = vcmask 769024   ;;  %vm850_vm11 = vcmask 760832  }
  0x4b   : > { %vm868_vm12 = vcmask 654336   ;;  %vm886_vm13 = vcmask 646144   ;;  %vm904_vm14 = vcmask 637952   ;;  %vm922_vm0 = vcmask 629760  }
  0x4d   : > { %1438 = vset.pattern.permute.xlu0 %v1613_v3 }
  0x4e   : > { %513 = vperm.xlu1 %1437, %v510_v8   ;;  %519 = vperm.xlu0 %1438, %v482_v6   ;;  %v1618_v8 = vmov 5  }
  0x52   : > { %1439 = vset.pattern.permute.xlu1 %v1614_v5 }
  0x53   : > { %545 = vperm.xlu1 %1439, %v482_v6  }
  0x57   : > { %1440 = vset.pattern.permute.xlu1 %v1615_v7 }
  0x58   : > { %571 = vperm.xlu1 %1440, %v482_v6   ;;  %v1617_v6 = vmov 6  }
  0x5c   : > { %1441 = vset.pattern.permute.xlu1 %v1614_v5  ;;  %v591_v5 = vrot.slane %v581_v60, %v1881_v22  ;;  %v1625_v22 = vmov 11  }
  0xbf   : > { %v603_v17 = vpop.permute.xlu0 %602  ;;  %v619_v18 = vpop.permute.xlu1 %618 }
  0xc0   : > { %v609_v23 = vmul.f32 %v608_v15, %v603_v17  ;;  %v625_v28 = vmul.f32 %v624_v20, %v619_v18  ;;  %v1620_v17 = vmov 7   ;;  %v1621_v18 = vmov 12  }
  0xc1   : > { %v1623_v20 = vmov 15  }
  0xc3   : > { %v614_v27 = vpop.permute.xlu0 %613 }
  0xc4   : > { %v616_v29 = vadd.f32 %v614_v27, %v609_v23  ;;  %v629_v30 = vpop.permute.xlu1 %628  ;;  %v1626_v23 = vmov 13  }
  0xc5   : > { %v635_v31 = vmul.f32 %v634_v21, %v629_v30  ;;  %v1624_v21 = vmov 10  }
  0xc6   : > { %v626_v34 = vadd.f32 %v625_v28, %v616_v29 }
  0xc8   : > { %v636_v39 = vadd.f32 %v635_v31, %v626_v34  ;;  %v639_v40 = vpop.permute.xlu0 %638 }
  0xc9   : > { %v645_v41 = vmul.f32 %v644_v32, %v639_v40  ;;  %v487_v42 = vpop.permute.xlu1 %486 }
  0xca   : > { %v508_v43 = vmul.f32 %v503_v35, %v487_v42  ;;  %v509_v44 = vmul.f32 %v507_v36, %v487_v42 }
  0xcb   : > { %v1884_v47 = vadd.f32 %v645_v41, %v636_v39 }
  0xcd   : > { %659 = vperm.xlu0 %1438, %v1884_v47   ;;  %677 = vperm.xlu1 %1441, %v1884_v47   ;;  %v514_v51 = vpop.permute.xlu1 %513  ;;  %v520_v52 = vpop.permute.xlu0 %519 }
  0xce   : > { %v516_v53 = vadd.f32 %v514_v51, %v508_v43  ;;  %v517_v54 = vadd.f32 %v514_v51, %v509_v44  ;;  %v540_v55 = vmul.f32 %v535_v45, %v520_v52  ;;  %v541_v56 = vmul.f32 %v539_v46, %v520_v52 }
  0xd0   : > { %v542_v62 = vadd.f32 %v540_v55, %v516_v53  ;;  %v543_v63 = vadd.f32 %v541_v56, %v517_v54 }
  0xd1   : > { %1442 = vset.pattern.permute.xlu0 %v1615_v7  ;;  %1443 = vset.pattern.permute.xlu1 %v1616_v61 }
  0xd2   : > { %695 = vperm.xlu0 %1442, %v1884_v47   ;;  %713 = vperm.xlu1 %1443, %v1884_v47   ;;  %v546_v0 = vpop.permute.xlu1 %545 }
  0xd3   : > { %v566_v1 = vmul.f32 %v561_v57, %v546_v0  ;;  %v567_v3 = vmul.f32 %v565_v58, %v546_v0 }
  0xd5   : > { %v568_v7 = vadd.f32 %v566_v1, %v542_v62  ;;  %v569_v10 = vadd.f32 %v567_v3, %v543_v63 }
  0xd6   : > { %1445 = vset.pattern.permute.xlu0 %v1617_v6  ;;  %1444 = vset.pattern.permute.xlu1 %v1618_v8 }
  0xd7   : > { %749 = vperm.xlu0 %1445, %v1884_v47   ;;  %731 = vperm.xlu1 %1444, %v1884_v47   ;;  %v572_v11 = vpop.permute.xlu1 %571 }
  0xd8   : > { %v592_v12 = vmul.f32 %v587_v4, %v572_v11  ;;  %v593_v13 = vmul.f32 %v591_v5, %v572_v11 }
  0xda   : > { %v1896_v14 = vadd.f32 %v592_v12, %v568_v7  ;;  %v1898_v15 = vadd.f32 %v593_v13, %v569_v10 }
  0xdb   : > { %1448 = vset.pattern.permute.xlu0 %v1619_v16  ;;  %1446 = vset.pattern.permute.xlu1 %v1620_v17 }
  0xdc   : > { %803 = vperm.xlu0 %1448, %v1884_v47   ;;  %767 = vperm.xlu1 %1446, %v1884_v47   ;;  %596 = vst [vmem:[%s1864_s10] sm:$0xff] %v1896_v14  ;;  %597 = vst [vmem:[%s1864_s10 + $0x8] sm:$0xff] %v1898_v15 }
  0xe0   : > { %1451 = vset.pattern.permute.xlu0 %v1621_v18  ;;  %1447 = vset.pattern.permute.xlu1 %v1622_v19 }
  0xe1   : > { %857 = vperm.xlu0 %1451, %v1884_v47   ;;  %785 = vperm.xlu1 %1447, %v1884_v47  }
  0xe5   : > { %1454 = vset.pattern.permute.xlu0 %v1623_v20  ;;  %1449 = vset.pattern.permute.xlu1 %v1624_v21 }
  0xe6   : > { %911 = vperm.xlu0 %1454, %v1884_v47   ;;  %821 = vperm.xlu1 %1449, %v1884_v47  }
  0xea   : > { %1450 = vset.pattern.permute.xlu1 %v1625_v22 }
  0xeb   : > { %839 = vperm.xlu1 %1450, %v1884_v47  }
  0xef   : > { %1452 = vset.pattern.permute.xlu1 %v1626_v23 }
  0xf0   : > { %875 = vperm.xlu1 %1452, %v1884_v47  }
  0xf4   : > { %1453 = vset.pattern.permute.xlu1 %v1627_v24 }
  0xf5   : > { %893 = vperm.xlu1 %1453, %v1884_v47  }
  0xf9   : > { %1455 = vset.pattern.permute.xlu1 %v1612_v2 }
  0xfa   : > { %651 = vperm.xlu1 %1455, %v1884_v47  }
 0x14c   : > { %v660_v25 = vpop.permute.xlu0 %659  ;;  %v678_v28 = vpop.permute.xlu1 %677 }
 0x14d   : > { %v662_v26 = vmul.f32 %v660_v25, %v1896_v14  ;;  %v663_v27 = vmul.f32 %v660_v25, %v1898_v15  ;;  %v680_v29 = vmul.f32 %v678_v28, %v1896_v14  ;;  %v681_v30 = vmul.f32 %v678_v28, %v1898_v15 }
 0x14f   : > { %668 = vrot.lane.b32.xlu0 %v663_v27, %s1628_s1  ;;  %666 = vrot.lane.b32.xlu1 %v662_v26, %s1628_s1 }
 0x151   : > { %v696_v31 = vpop.permute.xlu0 %695  ;;  %v714_v2 = vpop.permute.xlu1 %713 }
 0x152   : > { %v699_v32 = vmul.f32 %v696_v31, %v1898_v15  ;;  %v698_v33 = vmul.f32 %v696_v31, %v1896_v14  ;;  %v717_v34 = vmul.f32 %v714_v2, %v1898_v15  ;;  %v716_v35 = vmul.f32 %v714_v2, %v1896_v14 }
 0x153   : > { %686 = vrot.lane.b32.xlu0 %v681_v30, %s1629_s8  ;;  %684 = vrot.lane.b32.xlu1 %v680_v29, %s1629_s8 }
 0x156   : > { %v732_v36 = vpop.permute.xlu1 %731  ;;  %v750_v38 = vpop.permute.xlu0 %749 }
 0x157   : > { %704 = vrot.lane.b32.xlu0 %v699_v32, %s1630_s14  ;;  %702 = vrot.lane.b32.xlu1 %v698_v33, %s1630_s14  ;;  %v735_v37 = vmul.f32 %v732_v36, %v1898_v15  ;;  %v734_v39 = vmul.f32 %v732_v36, %v1896_v14  ;;  %v753_v41 = vmul.f32 %v750_v38, %v1898_v15 }
 0x158   : > { %v752_v42 = vmul.f32 %v750_v38, %v1896_v14 }
 0x15b   : > { %722 = vrot.lane.b32.xlu0 %v717_v34, %s1631_s20  ;;  %720 = vrot.lane.b32.xlu1 %v716_v35, %s1631_s20  ;;  %v768_v40 = vpop.permute.xlu1 %767  ;;  %v804_v47 = vpop.permute.xlu0 %803 }
 0x15c   : > { %v771_v43 = vmul.f32 %v768_v40, %v1898_v15  ;;  %v770_v44 = vmul.f32 %v768_v40, %v1896_v14  ;;  %v807_v50 = vmul.f32 %v804_v47, %v1898_v15  ;;  %v806_v51 = vmul.f32 %v804_v47, %v1896_v14 }
 0x15f   : > { %740 = vrot.lane.b32.xlu0 %v735_v37, %s1632_s21  ;;  %738 = vrot.lane.b32.xlu1 %v734_v39, %s1632_s21 }
 0x160   : > { %v786_v45 = vpop.permute.xlu1 %785  ;;  %v858_v56 = vpop.permute.xlu0 %857 }
 0x161   : > { %v789_v46 = vmul.f32 %v786_v45, %v1898_v15  ;;  %v788_v48 = vmul.f32 %v786_v45, %v1896_v14  ;;  %v861_v59 = vmul.f32 %v858_v56, %v1898_v15  ;;  %v860_v60 = vmul.f32 %v858_v56, %v1896_v14 }
 0x163   : > { %758 = vrot.lane.b32.xlu0 %v753_v41, %s1633_s24  ;;  %756 = vrot.lane.b32.xlu1 %v752_v42, %s1633_s24 }
 0x165   : > { %v822_v49 = vpop.permute.xlu1 %821  ;;  %v912_v1 = vpop.permute.xlu0 %911 }
 0x166   : > { %v825_v52 = vmul.f32 %v822_v49, %v1898_v15  ;;  %v824_v53 = vmul.f32 %v822_v49, %v1896_v14  ;;  %v915_v4 = vmul.f32 %v912_v1, %v1898_v15  ;;  %v914_v5 = vmul.f32 %v912_v1, %v1896_v14 }
 0x167   : > { %776 = vrot.lane.b32.xlu0 %v771_v43, %s1634_s25  ;;  %774 = vrot.lane.b32.xlu1 %v770_v44, %s1634_s25 }
 0x16a   : > { %v840_v54 = vpop.permute.xlu1 %839 }
 0x16b   : > { %794 = vrot.lane.b32.xlu0 %v789_v46, %s1635_s26  ;;  %792 = vrot.lane.b32.xlu1 %v788_v48, %s1635_s26  ;;  %v843_v55 = vmul.f32 %v840_v54, %v1898_v15  ;;  %v842_v57 = vmul.f32 %v840_v54, %v1896_v14 }
 0x16f   : > { %812 = vrot.lane.b32.xlu0 %v807_v50, %s1636_s18  ;;  %810 = vrot.lane.b32.xlu1 %v806_v51, %s1636_s18  ;;  %v876_v58 = vpop.permute.xlu1 %875  ;;  %v934_v51 = vand.u32 127, %v490_v9 }
 0x170   : > { %v879_v61 = vmul.f32 %v876_v58, %v1898_v15  ;;  %v878_v62 = vmul.f32 %v876_v58, %v1896_v14 }
 0x173   : > { %830 = vrot.lane.b32.xlu0 %v825_v52, %s1637_s29  ;;  %828 = vrot.lane.b32.xlu1 %v824_v53, %s1637_s29 }
 0x174   : > { %v894_v63 = vpop.permute.xlu1 %893 }
 0x175   : > { %v897_v0 = vmul.f32 %v894_v63, %v1898_v15  ;;  %v896_v3 = vmul.f32 %v894_v63, %v1896_v14 }
 0x177   : > { %848 = vrot.lane.b32.xlu0 %v843_v55, %s1638_s11  ;;  %846 = vrot.lane.b32.xlu1 %v842_v57, %s1638_s11 }
 0x179   : > { %v652_v6 = vpop.permute.xlu1 %651 }
 0x17a   : > { %v655_v24 = vmul.f32 %v652_v6, %v1898_v15  ;;  %v654_v27 = vmul.f32 %v652_v6, %v1896_v14 }
 0x17b   : > { %866 = vrot.lane.b32.xlu0 %v861_v59, %s1639_s12  ;;  %864 = vrot.lane.b32.xlu1 %v860_v60, %s1639_s12  ;;  %v935_v60 = vadd.s32 128, %v934_v51 }
 0x17f   : > { %884 = vrot.lane.b32.xlu0 %v879_v61, %s1640_s23  ;;  %882 = vrot.lane.b32.xlu1 %v878_v62, %s1640_s23 }
 0x183   : > { %902 = vrot.lane.b32.xlu0 %v897_v0, %s1641_s28  ;;  %900 = vrot.lane.b32.xlu1 %v896_v3, %s1641_s28 }
 0x187   : > { %920 = vrot.lane.b32.xlu0 %v915_v4, %s1642_s17  ;;  %918 = vrot.lane.b32.xlu1 %v914_v5, %s1642_s17  ;;  %v947_v5 = vand.u32 15, %v935_v60 }
 0x189   : > { %vm961_vm15 = vcmp.lt.s32.totalorder %v947_v5, 13 }
 0x1c1   : > { %v669_v8 = vpop.permute.xlu0 %668  ;;  %v667_v7 = vpop.permute.xlu1 %666 }
 0x1c2   : > { %v671_v25 = vsel %vm670_vm1, %v667_v7, %v669_v8  ;;  %v675_v28 = vadd.f32 %v669_v8, %v655_v24 }
 0x1c3   : > { %v674_v31 = vadd.f32 %v671_v25, %v654_v27 }
 0x1c5   : > { %v687_v10 = vpop.permute.xlu0 %686  ;;  %v685_v11 = vpop.permute.xlu1 %684 }
 0x1c6   : > { %v689_v30 = vsel %vm688_vm2, %v685_v11, %v687_v10  ;;  %v693_v2 = vadd.f32 %v687_v10, %v675_v28  ;;  %v940_v10 = vand.u32 15, %v934_v51  ;;  %vm974_vm2 = vcmask 7168  }
 0x1c7   : > { %v692_v34 = vadd.f32 %v689_v30, %v674_v31 }
 0x1c8   : > { %vm960_vm1 = vcmp.lt.s32.totalorder %v940_v10, 13 }
 0x1c9   : > { %v705_v12 = vpop.permute.xlu0 %704  ;;  %v703_v13 = vpop.permute.xlu1 %702 }
 0x1ca   : > { %v707_v32 = vsel %vm706_vm3, %v703_v13, %v705_v12  ;;  %v711_v35 = vadd.f32 %v705_v12, %v693_v2 }
 0x1cb   : > { %v710_v15 = vadd.f32 %v707_v32, %v692_v34 }
 0x1cd   : > { %v723_v16 = vpop.permute.xlu0 %722  ;;  %v721_v17 = vpop.permute.xlu1 %720 }
 0x1ce   : > { %v725_v37 = vsel %vm724_vm4, %v721_v17, %v723_v16  ;;  %v729_v38 = vadd.f32 %v723_v16, %v711_v35 }
 0x1cf   : > { %v728_v14 = vadd.f32 %v725_v37, %v710_v15  ;;  %v968_v37 = vld [vmem:[#allocation2] sm:$0xff] }
 0x1d1   : > { %v741_v18 = vpop.permute.xlu0 %740  ;;  %v739_v19 = vpop.permute.xlu1 %738 }
 0x1d2   : > { %v743_v39 = vsel %vm742_vm5, %v739_v19, %v741_v18  ;;  %v747_v41 = vadd.f32 %v741_v18, %v729_v38  ;;  %v976_v38 = vld [vmem:[#allocation3] sm:$0xff] }
 0x1d3   : > { %v746_v44 = vadd.f32 %v743_v39, %v728_v14 }
 0x1d5   : > { %v759_v20 = vpop.permute.xlu0 %758  ;;  %v757_v21 = vpop.permute.xlu1 %756 }
 0x1d6   : > { %v761_v43 = vsel %vm760_vm6, %v757_v21, %v759_v20  ;;  %v765_v45 = vadd.f32 %v759_v20, %v747_v41 }
 0x1d7   : > { %v764_v48 = vadd.f32 %v761_v43, %v746_v44  ;;  %v1644_v43 = vmov (!%p1279_p8), 0  }
 0x1d8   : > { %1456 = vset.pattern.permute.xlu0 (!%p1279_p8), %v1644_v43 }
 0x1d9   : > { %v777_v22 = vpop.permute.xlu0 %776  ;;  %v775_v23 = vpop.permute.xlu1 %774 }
 0x1da   : > { %v779_v46 = vsel %vm778_vm7, %v775_v23, %v777_v22  ;;  %v783_v49 = vadd.f32 %v777_v22, %v765_v45  ;;  %v1643_v22 = vmov 0.0  }
 0x1db   : > { %v782_v53 = vadd.f32 %v779_v46, %v764_v48  ;;  %v1278_v23 = vsel %vm961_vm15, 1.0, %v1643_v22  ;;  %v1277_v28 = vsel %vm960_vm1, 1.0, %v1643_v22 }
 0x1dd   : > { %v795_v26 = vpop.permute.xlu0 %794  ;;  %v793_v29 = vpop.permute.xlu1 %792 }
 0x1de   : > { %v797_v52 = vsel %vm796_vm8, %v793_v29, %v795_v26  ;;  %v801_v54 = vadd.f32 %v795_v26, %v783_v49  ;;  %v995_v49 = vld [vmem:[%s470_s22] sm:$0xff] (!%p1279_p8) }
 0x1df   : > { %v800_v57 = vadd.f32 %v797_v52, %v782_v53  ;;  %v999_v52 = vld [vmem:[%s474_s2] sm:$0xff] (!%p1279_p8) }
 0x1e1   : > { %v813_v33 = vpop.permute.xlu0 %812  ;;  %v811_v36 = vpop.permute.xlu1 %810 }
 0x1e2   : > { %v815_v55 = vsel %vm814_vm9, %v811_v36, %v813_v33  ;;  %v819_v58 = vadd.f32 %v813_v33, %v801_v54 }
 0x1e3   : > { %v818_v62 = vadd.f32 %v815_v55, %v800_v57 }
 0x1e5   : > { %v831_v40 = vpop.permute.xlu0 %830  ;;  %v829_v42 = vpop.permute.xlu1 %828 }
 0x1e6   : > { %v833_v61 = vsel %vm832_vm10, %v829_v42, %v831_v40  ;;  %v837_v63 = vadd.f32 %v831_v40, %v819_v58 }
 0x1e7   : > { %v836_v3 = vadd.f32 %v833_v61, %v818_v62 }
 0x1e9   : > { %v849_v47 = vpop.permute.xlu0 %848  ;;  %v847_v50 = vpop.permute.xlu1 %846 }
 0x1ea   : > { %v851_v0 = vsel %vm850_vm11, %v847_v50, %v849_v47  ;;  %v855_v9 = vadd.f32 %v849_v47, %v837_v63 }
 0x1eb   : > { %v854_v8 = vadd.f32 %v851_v0, %v836_v3 }
 0x1ed   : > { %v867_v56 = vpop.permute.xlu0 %866  ;;  %v865_v59 = vpop.permute.xlu1 %864 }
 0x1ee   : > { %v869_v6 = vsel %vm868_vm12, %v865_v59, %v867_v56  ;;  %v873_v7 = vadd.f32 %v867_v56, %v855_v9 }
 0x1ef   : > { %v872_v13 = vadd.f32 %v869_v6, %v854_v8 }
 0x1f1   : > { %v885_v1 = vpop.permute.xlu0 %884  ;;  %v883_v4 = vpop.permute.xlu1 %882 }
 0x1f2   : > { %v887_v11 = vsel %vm886_vm13, %v883_v4, %v885_v1  ;;  %v891_v16 = vadd.f32 %v885_v1, %v873_v7 }
 0x1f3   : > { %v890_v19 = vadd.f32 %v887_v11, %v872_v13 }
 0x1f5   : > { %v903_v12 = vpop.permute.xlu0 %902  ;;  %v901_v17 = vpop.permute.xlu1 %900 }
 0x1f6   : > { %v905_v18 = vsel %vm904_vm14, %v901_v17, %v903_v12  ;;  %v909_v20 = vadd.f32 %v903_v12, %v891_v16 }
 0x1f7   : > { %v908_v24 = vadd.f32 %v905_v18, %v890_v19 }
 0x1f9   : > { %v921_v21 = vpop.permute.xlu0 %920  ;;  %v919_v26 = vpop.permute.xlu1 %918 }
 0x1fa   : > { %v927_v25 = vadd.f32 %v921_v21, %v909_v20  ;;  %v923_v27 = vsel %vm922_vm0, %v919_v26, %v921_v21 }
 0x1fb   : > { %v926_v29 = vadd.f32 %v923_v27, %v908_v24 }
 0x1fc   : > { %932 = vst.msk [vmem:[%s930_s19 + $0x8] sm:$0xff] %vm922_vm0, %v927_v25  ;;  %v967_v30 = vmul.f32 %v1278_v23, %v927_v25 }
 0x1fd   : > { %931 = vst [vmem:[%s930_s19] sm:$0xff] %v926_v29  ;;  %v966_v31 = vmul.f32 %v1277_v28, %v926_v29 }
 0x1fe   : > { %v969_v2 = vsel %vm922_vm0, %v967_v30, 0.0  ;;  %v978_v32 = vmul.f32 %v967_v30, %v927_v25 }
 0x1ff   : > { %v970_v33 = vadd.f32 %v969_v2, %v966_v31  ;;  %v977_v34 = vmul.f32 %v966_v31, %v926_v29 }
 0x200   : > { %v979_v35 = vsel %vm922_vm0, %v978_v32, 0.0 }
 0x201   : > { %971 = vadd.xlane.f32.xlu1 %v970_v33  ;;  %v980_v36 = vadd.f32 %v979_v35, %v977_v34 }
 0x203   : > { %981 = vadd.xlane.f32.xlu0 %v980_v36 }
 0x204   : > { %v1002_v55 = vld [vmem:[%s1866_s9] sm:$0xff] (!%p1279_p8)  ;;  %v1003_v57 = vld [vmem:[%s1866_s9 + $0x8] sm:$0xff] (!%p1279_p8)  ;;  %v1280_v58 = vld [vmem:[%s1866_s9 + $0x10] sm:$0xff] (!%p1279_p8) }
 0x205   : > { %v1281_v59 = vld [vmem:[%s1866_s9 + $0x18] sm:$0xff] (!%p1279_p8) }
 0x28d   : > { %988 = sbr.rel (%p1279_p8) target bundleno = 822 (0x336), region = 60 }
 0x28e   : > { %v972_v15 = vpop.xlane.xlu1 %971 }
 0x28f   : > { %v973_v39 = vadd.f32 %v972_v15, %v968_v37 }
 0x290   : > { %v982_v40 = vpop.xlane.xlu0 %981 }
 0x291   : > { %975 = vst.msk [vmem:[#allocation2] sm:$0xff] %vm974_vm2, %v973_v39  ;;  %v983_v14 = vadd.f32 %v982_v40, %v976_v38 }
 0x293   : > { %984 = vst.msk [vmem:[#allocation3] sm:$0xff] %vm974_vm2, %v983_v14 }
 0x298   : > { %v989_v41 = vld [vmem:[#allocation2] sm:$0xff] }
 0x299   : > { %v990_v44 = vmul.f32 0.00295858, %v989_v41 }
 0x29a   : > { %v991_v42 = vld [vmem:[#allocation3] sm:$0xff] }
 0x29b   : > { %v992_v45 = vmul.f32 0.00295858, %v991_v42  ;;  %v993_v46 = vmul.f32 %v990_v44, %v990_v44 }
 0x29d   : > { %v994_v47 = vsub.f32 %v992_v45, %v993_v46 }
 0x29f   : > { %v996_v48 = vadd.f32 1e-05, %v994_v47 }
 0x2a1   : > { %1457 = vrsqrt.f32 %v996_v48 }
 0x2ab   : > { %v1458_v50 = vpop.eup %1457 }
 0x2ac   : > { %v998_v51 = vmul.f32 %v1458_v50, %v995_v49 }
 0x2ae   : > { %1006 = vperm.xlu0 %1456, %v998_v51   ;;  %v1000_v53 = vmul.f32 %v998_v51, %v990_v44 }
 0x2b0   : > { %v1001_v54 = vsub.f32 %v999_v52, %v1000_v53 }
 0x2b2   : > { %1013 = vperm.xlu0 %1456, %v1001_v54  }
 0x32d   : > { %v1007_v56 = vpop.permute.xlu0 %1006 }
 0x32e   : > { %v1009_v60 = vmul.f32 %v1007_v56, %v1002_v55  ;;  %v1010_v61 = vmul.f32 %v1007_v56, %v1003_v57  ;;  %v1023_v62 = vmul.f32 %v1280_v58, %v1007_v56  ;;  %v1024_v63 = vmul.f32 %v1281_v59, %v1007_v56 }
 0x331   : > { %v1014_v0 = vpop.permute.xlu0 %1013 }
 0x332   : > { %v1016_v1 = vadd.f32 %v1014_v0, %v1009_v60  ;;  %v1017_v3 = vadd.f32 %v1014_v0, %v1010_v61  ;;  %v1025_v9 = vadd.f32 %v1023_v62, %v1014_v0  ;;  %v1026_v4 = vadd.f32 %v1024_v63, %v1014_v0 }
 0x334   : > { %1018 = vst [vmem:[%s1866_s9] sm:$0xff] %v1016_v1  ;;  %1019 = vst.msk [vmem:[%s1866_s9 + $0x8] sm:$0xff] %vm922_vm0, %v1017_v3 }
 0x335   : > { %1282 = vst [vmem:[%s1866_s9 + $0x10] sm:$0xff] %v1025_v9  ;;  %1283 = vst.msk [vmem:[%s1866_s9 + $0x18] sm:$0xff] %vm922_vm0, %v1026_v4 }
 0x336 PF: > { %s1286_s2 = sshll.u32 %s1597_s16, 1  ;;  %s1287_s30 = sshll.u32 %s1593_s15, 3 }
 0x337   : > { %s1051_s22 = sshll.u32 %s1864_s10, 4  ;;  %s1047_s21 = sadd.s32 %s1287_s30, %s1286_s2  ;;  %s1978_s22 = int_to_ptr.vmem [resolvable:$true] %s1051_s22 }
 0x338   : > { %s1288_s24 = sshll.u32 %s1047_s21, 7  ;;  %s2143_s18 = sld [smem:[#allocation28_spill]] }
 0x339   : > { %s1295_s12 = sshll.u32 %s1597_s16, 8  ;;  %s2145_s23 = sand.u32 1, %s1585_s13  }
 0x33a   : > { %s1030_s28 = scalar_lea.sflag [#allocation5], %s2145_s23  ;;  %s1459_s17 = scalar_lea.vmem %s1978_s22, 256 }
 0x33b   : > { %p1460_p9 = scmp.ne.s32.totalorder %s1978_s22, %s1459_s17  ;;  %s1645_s10 = smov [#allocation4]  }
 0x33c   : > { %s1463_s15 = sshll.u32 %s1645_s10, 4  ;;  %s1464_s15 = int_to_ptr.vmem [resolvable:$false] %s1463_s15 }
 0x33d   : > { %p1461_p10 = pnand %p1460_p9, %p1773_p3  ;;  %s1465_s0 = scalar_lea.vmem %s1464_s15, 512 }
 0x33e   : > { %s2144_s29 = smov %s2143_s18  ;;  %s1983_s11 = scalar_lea.hbm %s2143_s18, %s1288_s24 }
 0x33f   : > { %p1462_p11 = pneg %p1461_p10  ;;  %p1466_p0 = scmp.lt.s32.totalorder %s1978_s22, %s1464_s15 }
 0x340   : > { %p1467_p1 = scmp.lt.s32.totalorder %s1465_s0, %s1459_s17 }
 0x342   : > { %p1468_p4 = por %p1467_p1, %p1466_p0 }
 0x344   : > { %p1469_p2 = pnand %p1468_p4, %p1462_p11 }
 0x346   : > { %1472 = shalt.err (!%p1469_p2)
}
 0x347   : > { %s1473_s19 = scalar_lea.hbm %s1983_s11, 256  ;;  %s1477_s14 = scalar_lea.hbm %s2144_s29, 2048 }
 0x348   : > { %p1474_p5 = scmp.ne.s32.totalorder %s1983_s11, %s1473_s19  ;;  %p1478_p9 = scmp.lt.u32.totalorder %s1983_s11, %s2144_s29 }
 0x349   : > { %p1479_p10 = scmp.lt.u32.totalorder %s1477_s14, %s1473_s19  ;;  %p1481_p0 = scmp.lt.u32.totalorder %s1473_s19, %s1983_s11 }
 0x34a   : > { %p1475_p6 = pnand %p1474_p5, %p1773_p3 }
 0x34b   : > { %p1480_p11 = por %p1479_p10, %p1478_p9 }
 0x34c   : > { %p1476_p8 = pneg %p1475_p6 }
 0x34d   : > { %p1482_p1 = por %p1481_p0, %p1480_p11 }
 0x34f   : > { %p1483_p4 = pnand %p1482_p1, %p1476_p8 }
 0x351   : > { %1486 = shalt.err (!%p1483_p4)
}
 0x352   : > { %s2146_s30 = sld [smem:[#allocation11_spill]]  ;;  %s2148_s26 = sld [smem:[#allocation29_spill]] }
 0x353   : > { %1296 = dma.vmem_to_hbm [thread:$0]  (%p1773_p3), %s1978_s22, 256, %s1983_s11, %s1030_s28  }
 0x354   : > { %s1064_s23 = sshll.u32 %s1866_s9, 4  ;;  %s1646_s16 = smov [#allocation6]   ;;  %s2017_s23 = int_to_ptr.vmem [resolvable:$true] %s1064_s23 }
 0x355   : > { %s1487_s10 = scalar_lea.vmem %s2017_s23, 512  ;;  %s1491_s22 = sshll.u32 %s1646_s16, 4  ;;  %s1492_s22 = int_to_ptr.vmem [resolvable:$false] %s1491_s22 }
 0x356   : > { %p1488_p2 = scmp.ne.s32.totalorder %s2017_s23, %s1487_s10  ;;  %s1493_s11 = scalar_lea.vmem %s1492_s22, 1024 }
 0x357   : > { %p1494_p6 = scmp.lt.s32.totalorder %s2017_s23, %s1492_s22  ;;  %p1495_p8 = scmp.lt.s32.totalorder %s1493_s11, %s1487_s10 }
 0x358   : > { %s2014_s18 = scalar_lea.hbm %s2148_s26, %s1295_s12  ;;  %s2149_s17 = sand.u32 1, %s2146_s30  }
 0x359   : > { %s2021_s27 = scalar_lea.sflag [#allocation7], %s2149_s17  ;;  %p1489_p5 = pnand %p1488_p2, %p1800_p12 }
 0x35a   : > { %p1496_p9 = por %p1495_p8, %p1494_p6 }
 0x35b   : > { %p1490_p3 = pneg %p1489_p5 }
 0x35d   : > { %p1497_p10 = pnand %p1496_p9, %p1490_p3 }
 0x35f   : > { %1500 = shalt.err (!%p1497_p10)
}
 0x360   : > { %s1501_s9 = scalar_lea.hbm %s2014_s18, 512  ;;  %s1505_s15 = scalar_lea.hbm %s2148_s26, 2048 }
 0x361   : > { %p1502_p11 = scmp.ne.s32.totalorder %s2014_s18, %s1501_s9  ;;  %p1506_p4 = scmp.lt.u32.totalorder %s2014_s18, %s2148_s26 }
 0x362   : > { %p1507_p2 = scmp.lt.u32.totalorder %s1505_s15, %s1501_s9  ;;  %p1509_p3 = scmp.lt.u32.totalorder %s1501_s9, %s2014_s18 }
 0x363   : > { %p1503_p0 = pnand %p1502_p11, %p1800_p12 }
 0x364   : > { %p1508_p5 = por %p1507_p2, %p1506_p4 }
 0x365   : > { %p1504_p1 = pneg %p1503_p0 }
 0x366   : > { %p1510_p6 = por %p1509_p3, %p1508_p5 }
 0x368   : > { %p1511_p8 = pnand %p1510_p6, %p1504_p1 }
 0x36a   : > { %1514 = shalt.err (!%p1511_p8)
}
 0x36b   : > { %s1647_s1 = smov 256   ;;  %s1648_s8 = smov 1024  }
 0x36c   : > { %s1649_s14 = smov 16  }
 0x36d   : > { %1297 = dma.vmem_to_hbm [thread:$0]  (%p1800_p12), %s2017_s23, 512, %s2014_s18, %s2021_s27, %s1647_s1, %s1648_s8, %s1649_s14  }
 0x36e PF: > { %s2150_s20 = sld [smem:[#allocation17_spill]]  ;;  %s2151_s2 = sld [smem:[#allocation13_spill]] }
 0x374   : > { %p1307_p9 = scmp.ge.s32.totalorder %s2150_s20, 2  ;;  %s1079_s24 = sand.u32 1, %s2151_s2  }
 0x375   : > { %s1080_s25 = scalar_lea.sflag [#allocation5], %s1079_s24 }
 0x376   : > { %p1301_p10 = pnand %p1307_p9, %p1788_p7 }
 0x378   : > { %1560 = dma.done.wait (!%p1301_p10), %s1080_s25, 256  }
 0x379   : > { %1562 = vsyncadd (!%p1301_p10), %s1080_s25, 4294967040  ;;  %s2153_s17 = sld [smem:[#allocation10_spill]]  ;;  %p1304_p11 = pnand %p1307_p9, %p1812_p13 }
 0x37f   : > { %s1088_s16 = sand.u32 1, %s2153_s17  }
 0x380   : > { %s1089_s22 = scalar_lea.sflag [#allocation7], %s1088_s16 }
 0x381   : > { %1564 = dma.done.wait (!%p1304_p11), %s1089_s22, 512  }
 0x382   : > { %1566 = vsyncadd (!%p1304_p11), %s1089_s22, 4294966784  ;;  %s26_s19 = sadd.s32 1, %s2150_s20   ;;  %s2155_s30 = sld [smem:[#allocation11_spill]] }
 0x383   : > { %p23_p12 = scmp.ge.s32.totalorder %s26_s19, 10   ;;  %s2156_s10 = sld [smem:[#allocation12_spill]] }
 0x384   : > { %s2157_s11 = sld [smem:[#allocation22_spill]]  ;;  %s2158_s21 = sld [smem:[#allocation14_spill]] }
 0x385   : > { %s2159_s14 = sld [smem:[#allocation23_spill]]  ;;  %s2160_s15 = sld [smem:[#allocation15_spill]] }
 0x386   : > { %s2161_s16 = sld [smem:[#allocation16_spill]]  ;;  %s2162_s17 = sld [smem:[#allocation18_spill]] }
 0x387   : > { %s2163_s18 = sld [smem:[#allocation19_spill]]  ;;  %s2164_s12 = smov %s1585_s13 }
 0x388   :  { %25 = sbr.rel (!%p23_p12) target bundleno = 15 (0xf), region = 135 }
 0x38a   : > { %s2165_s13 = smov %s2158_s21 }
 0x38f   :  { %1094 = vsyncpa [#allocation5], 1 }
 0x390   :  { %1096 = vsyncpa [#allocation5 + $0x1], 1 }
 0x391   :  { %1097 = vsyncpa [#allocation7], 1 }
 0x392   :  { %1099 = vsyncpa [#allocation7 + $0x1], 1 }

</bundles_post_ra>
